<compile_context>
chip_gen: v7x
topology: tpu7x:2x2x1
jax: 0.10.0
libtpu: 0.0.40
codegen_flags: <defaults>
</compile_context>

<pallas_src>
import jax
import jax.numpy as jnp
from jax import lax
from jax.experimental import pallas as pl
from jax.experimental.pallas import tpu as pltpu

K, S, P = 7, 2, 3          # conv kernel / stride / autopad(7) = 3
PK, PS, PP = 3, 2, 1       # maxpool kernel / stride / padding
BN_EPS = 1e-5
COMPUTE_DTYPE = jnp.bfloat16   # MXU operand + output dtype (accumulation stays f32)


def _make_kernel(OH, OW, PW, TPH, KC7, COP, R):
    CONV_ROWS = 2 * TPH + 1        # conv rows per step (incl. 1-row pooling halo each side)
    RPADW = 2 * PW - OW            # right zero-pad width for the column pool (0 or 1)
    # A bottom pool-padding conv row (index >= OH) can only ever occur when this holds.
    APPLY_BOT = (2 * R * TPH - 1) >= OH

    def kernel(p_ref, w_ref, shift_ref, o_ref):
        # p_ref:     (2, EO_ROWS, OW, KC7) bf16 column-tap patches (even/odd input rows)
        # w_ref:     (K, KC7, COP) bf16 per-row-tap weights, BN scale folded in
        # shift_ref: (1, COP) f32 folded BN shift
        # o_ref:     (TPH, PW, COP) bf16 pooled output rows
        r = pl.program_id(1)

        # ---- Conv2d(7, s=2, p=3, bias=False): 7 row-tap MXU matmuls, f32 accumulation
        def tap(ki):
            par, m = ki % 2, ki // 2
            lhs = p_ref[par, m:m + CONV_ROWS, :, :].reshape(CONV_ROWS * OW, KC7)
            return jnp.dot(lhs, w_ref[ki], preferred_element_type=jnp.float32)

        acc = tap(0)
        for ki in range(1, K):
            acc = acc + tap(ki)

        # ---- BatchNorm (scale already folded into weights) + ReLU
        y3 = jnp.maximum(acc + shift_ref[...], 0.0).reshape(CONV_ROWS, OW, COP)

        # ---- MaxPool2d(3, s=2, p=1): rows first.  Zero padding stands in for -inf
        # because y3 >= 0 (post-ReLU).  Only the first/last halo planes are masked.
        rows = []
        for q in range(TPH):
            top = y3[2 * q]                                    # conv row 2p-1
            if q == 0:                                         # can be -1 only in tile r==0
                top = top * (r > 0).astype(jnp.float32)
            mid = y3[2 * q + 1]                                # conv row 2p (always valid)
            bot = y3[2 * q + 2]                                # conv row 2p+1
            if APPLY_BOT:                                      # may fall past OH-1
                bot = bot * (2 * (r * TPH + q) + 1 < OH).astype(jnp.float32)
            rows.append(jnp.maximum(jnp.maximum(top, mid), bot))
        rp = jnp.stack(rows, axis=0)                           # (TPH, OW, COP)

        # ---- then pool columns: window (2w-1, 2w, 2w+1), zero pad left/right
        yp = jnp.pad(rp, ((0, 0), (1, RPADW), (0, 0)))          # (TPH, 2*PW+1, COP)
        ca = yp[:, 0:2 * PW, :].reshape(TPH, PW, 2, COP).max(axis=2)
        cb = yp[:, 1:2 * PW + 1, :].reshape(TPH, PW, 2, COP).max(axis=2)
        o_ref[...] = jnp.maximum(ca, cb).astype(o_ref.dtype)    # lane-dense bf16 store

    return kernel


@jax.jit
def common_block_nhwc(x_nchw, w_oihw, gamma, beta, run_mean, run_var):
    """Fast path: returns (N, R*TPH, PW, COP) bf16 NHWC (channel/row padded)."""
    N, Cin, H, W = x_nchw.shape
    Cout = w_oihw.shape[0]
    OH = (H + 2 * P - K) // S + 1
    OW = (W + 2 * P - K) // S + 1
    PH = (OH + 2 * PP - PK) // PS + 1
    PW = (OW + 2 * PP - PK) // PS + 1

    KC7 = K * Cin                               # per-row-tap contraction dim (7 column taps)
    COP = ((Cout + 127) // 128) * 128           # lane-dense padded Cout
    TPH = min(PH, 8)                            # pooled rows per grid step
    R = pl.cdiv(PH, TPH)                        # row tiles (ragged tail masked/dropped)
    CONV_ROWS = 2 * TPH + 1
    EO_ROWS = 2 * TPH + 4                       # even/odd input half-rows per tile (incl. halo)

    # ---- column-tap im2col only (7x, not 49x): (N, Hpad, OW, 7*Cin), channel = kj*Cin+cin
    x = jnp.transpose(x_nchw, (0, 2, 3, 1)).astype(COMPUTE_DTYPE)   # NHWC bf16
    xpad = jnp.pad(x, ((0, 0), (P, P), (P, P), (0, 0)))
    Hpad = H + 2 * P
    taps = [lax.slice(xpad, (0, 0, kj, 0),
                      (N, Hpad, kj + S * (OW - 1) + 1, Cin),
                      (1, 1, S, 1)) for kj in range(K)]
    ctap = jnp.concatenate(taps, axis=-1)                           # (N, Hpad, OW, KC7)

    # split into even/odd input rows and gather disjoint per-row-tile blocks (+halo)
    ceven, codd = ctap[:, 0::2], ctap[:, 1::2]
    He, Ho = ceven.shape[1], codd.shape[1]
    idx = 2 * TPH * jnp.arange(R)[:, None] - 1 + jnp.arange(EO_ROWS)[None, :]   # (R, EO_ROWS)
    ev = jnp.take(ceven, jnp.clip(idx, 0, He - 1), axis=1)          # (N, R, EO_ROWS, OW, KC7)
    od = jnp.take(codd, jnp.clip(idx, 0, Ho - 1), axis=1)
    patches = jnp.stack([ev, od], axis=2)                           # (N, R, 2, EO_ROWS, OW, KC7)
    patches = patches.reshape(N * R, 2, EO_ROWS, OW, KC7)

    # ---- weights: fold BN scale in f32 BEFORE the bf16 cast; bias-free conv
    scale = gamma / jnp.sqrt(run_var + BN_EPS)
    shift = beta - run_mean * scale
    w_t = jnp.transpose(w_oihw, (2, 3, 1, 0)).reshape(K, KC7, Cout).astype(jnp.float32)
    w_t = w_t * scale[None, None, :]
    w_t = jnp.pad(w_t, ((0, 0), (0, 0), (0, COP - Cout))).astype(COMPUTE_DTYPE)   # (7, KC7, COP)
    shift_p = jnp.pad(shift, (0, COP - Cout)).reshape(1, COP).astype(jnp.float32)

    flops = 2 * N * R * CONV_ROWS * OW * KC7 * K * COP
    bytes_accessed = (patches.size * 2 + w_t.size * 2 + shift_p.size * 4
                      + N * R * TPH * PW * COP * 2)

    kernel = _make_kernel(OH, OW, PW, TPH, KC7, COP, R)
    out = pl.pallas_call(
        kernel,
        out_shape=jax.ShapeDtypeStruct((N, R * TPH, PW, COP), COMPUTE_DTYPE),
        grid_spec=pltpu.PrefetchScalarGridSpec(
            num_scalar_prefetch=0,
            grid=(N, R),
            in_specs=[
                pl.BlockSpec((None, 2, EO_ROWS, OW, KC7),
                             lambda n, r: (n * R + r, 0, 0, 0, 0)),
                pl.BlockSpec((K, KC7, COP), lambda n, r: (0, 0, 0)),
                pl.BlockSpec((1, COP), lambda n, r: (0, 0)),
            ],
            out_specs=pl.BlockSpec((None, TPH, PW, COP), lambda n, r: (n, r, 0, 0)),
        ),
        compiler_params=pltpu.CompilerParams(
            dimension_semantics=("parallel", "parallel"),
            vmem_limit_bytes=32 * 1024 * 1024),
        cost_estimate=pl.CostEstimate(flops=flops, transcendentals=0,
                                      bytes_accessed=bytes_accessed),
    )(patches, w_t, shift_p)
    return out


@jax.jit
def common_block(x_nchw, w_oihw, gamma, beta, run_mean, run_var):
    """Drop-in CommonBlock.forward: (N, Cin, H, W) -> (N, Cout, PH, PW) (bf16 values).

    NOTE: prefer consuming `common_block_nhwc` directly and fusing the channel slice /
    NHWC->NCHW transpose into the consumer; this wrapper only reproduces the PyTorch
    module's NCHW contract."""
    N, Cin, H, W = x_nchw.shape
    Cout = w_oihw.shape[0]
    OH = (H + 2 * P - K) // S + 1
    OW = (W + 2 * P - K) // S + 1
    PH = (OH + 2 * PP - PK) // PS + 1
    out = common_block_nhwc(x_nchw, w_oihw, gamma, beta, run_mean, run_var)
    out = out[:, :PH, :, :Cout]
    return jnp.transpose(out, (0, 3, 1, 2))


def reference(x_nchw, w_oihw, gamma, beta, run_mean, run_var):
    """Pure-JAX reference mirroring the kernel's bf16 operand / output rounding."""
    scale = gamma / jnp.sqrt(run_var + BN_EPS)
    shift = beta - run_mean * scale
    x = jnp.transpose(x_nchw, (0, 2, 3, 1)).astype(COMPUTE_DTYPE).astype(jnp.float32)
    w = w_oihw * scale[:, None, None, None]                 # fold BN scale (f32)
    w = jnp.transpose(w, (2, 3, 1, 0)).astype(COMPUTE_DTYPE).astype(jnp.float32)  # HWIO
    y = lax.conv_general_dilated(x, w, (S, S), ((P, P), (P, P)),
                                 dimension_numbers=("NHWC", "HWIO", "NHWC"),
                                 precision=lax.Precision.HIGHEST)
    y = jnp.maximum(y + shift, 0.0)
    y = lax.reduce_window(y, -jnp.inf, lax.max,
                          (1, PK, PK, 1), (1, PS, PS, 1),
                          ((0, 0), (PP, PP), (PP, PP), (0, 0)))
    y = y.astype(COMPUTE_DTYPE).astype(jnp.float32)
    return jnp.transpose(y, (0, 3, 1, 2))


if __name__ == "__main__":
    key = jax.random.PRNGKey(0)
    kx, kw, kg, kb, km, kv = jax.random.split(key, 6)

    N, Cin, Cout, H, W = 2, 4, 8, 16, 16
    x = jax.random.normal(kx, (N, Cin, H, W), jnp.float32)
    w = 0.1 * jax.random.normal(kw, (Cout, Cin, K, K), jnp.float32)      # conv weight (OIHW)
    gamma = 1.0 + 0.1 * jax.random.normal(kg, (Cout,), jnp.float32)       # bn.weight
    beta = 0.1 * jax.random.normal(kb, (Cout,), jnp.float32)              # bn.bias
    run_mean = 0.1 * jax.random.normal(km, (Cout,), jnp.float32)          # bn.running_mean
    run_var = jax.random.uniform(kv, (Cout,), jnp.float32, 0.5, 1.5)      # bn.running_var

    out = jax.block_until_ready(common_block(x, w, gamma, beta, run_mean, run_var))
    ref = reference(x, w, gamma, beta, run_mean, run_var)

    assert out.shape == (N, Cout, 4, 4), out.shape
    out_f32 = out.astype(jnp.float32)
    err = float(jnp.max(jnp.abs(out_f32 - ref)))
    assert jnp.allclose(out_f32, ref, atol=2e-2, rtol=2e-2), err
    print("KERNEL_OK")
</pallas_src>

<mosaic_0001>
module attributes {stable_mosaic.version = 11 : i64} {
  func.func @kernel(%arg0: i32, %arg1: i32, %arg2: memref<1x2x12x8x28xbf16, #tpu.memory_space<vmem>>, %arg3: memref<7x28x128xbf16, #tpu.memory_space<vmem>>, %arg4: memref<1x128xf32, #tpu.memory_space<vmem>>, %arg5: memref<1x4x4x128xbf16, #tpu.memory_space<vmem>>) attributes {dimension_semantics = [#tpu.dimension_semantics<parallel>, #tpu.dimension_semantics<parallel>], iteration_bounds = array<i64: 2, 1>, scalar_prefetch = 0 : i64, scratch_operands = 0 : i64, tpu.core_type = #tpu.core_type<tc>, window_params = [{transform_indices = @transform_0, window_bounds = array<i64: 1, 2, 12, 8, 28>}, {pipeline_mode = #tpu.pipeline_mode<synchronous>, transform_indices = @transform_1, window_bounds = array<i64: 7, 28, 128>}, {pipeline_mode = #tpu.pipeline_mode<synchronous>, transform_indices = @transform_2, window_bounds = array<i64: 1, 128>}, {transform_indices = @transform_3, window_bounds = array<i64: 1, 4, 4, 128>}]} {
    %c0 = arith.constant 0 : index
    %c0_0 = arith.constant 0 : index
    %c0_1 = arith.constant 0 : index
    %c0_2 = arith.constant 0 : index
    %c0_3 = arith.constant 0 : index
    %0 = vector.load %arg2[%c0, %c0_0, %c0_1, %c0_2, %c0_3] : memref<1x2x12x8x28xbf16, #tpu.memory_space<vmem>>, vector<1x1x9x8x28xbf16>
    %1 = vector.shape_cast %0 : vector<1x1x9x8x28xbf16> to vector<9x8x28xbf16>
    %2 = vector.shape_cast %1 : vector<9x8x28xbf16> to vector<72x28xbf16>
    %c0_4 = arith.constant 0 : index
    %c0_5 = arith.constant 0 : index
    %c0_6 = arith.constant 0 : index
    %3 = vector.load %arg3[%c0_4, %c0_5, %c0_6] : memref<7x28x128xbf16, #tpu.memory_space<vmem>>, vector<1x28x128xbf16>
    %4 = vector.shape_cast %3 : vector<1x28x128xbf16> to vector<28x128xbf16>
    %cst = arith.constant dense<0.000000e+00> : vector<72x128xf32>
    %5 = tpu.matmul %2, %4, %cst {dimension_numbers = #tpu.dot_dimension_numbers<[1], [0], [0], [1], [0, 0, 1, 1], [], []>} : vector<72x28xbf16>, vector<28x128xbf16>, vector<72x128xf32> -> vector<72x128xf32>
    %c0_7 = arith.constant 0 : index
    %c1 = arith.constant 1 : index
    %c0_8 = arith.constant 0 : index
    %c0_9 = arith.constant 0 : index
    %c0_10 = arith.constant 0 : index
    %6 = vector.load %arg2[%c0_7, %c1, %c0_8, %c0_9, %c0_10] : memref<1x2x12x8x28xbf16, #tpu.memory_space<vmem>>, vector<1x1x9x8x28xbf16>
    %7 = vector.shape_cast %6 : vector<1x1x9x8x28xbf16> to vector<9x8x28xbf16>
    %8 = vector.shape_cast %7 : vector<9x8x28xbf16> to vector<72x28xbf16>
    %c1_11 = arith.constant 1 : index
    %c0_12 = arith.constant 0 : index
    %c0_13 = arith.constant 0 : index
    %9 = vector.load %arg3[%c1_11, %c0_12, %c0_13] : memref<7x28x128xbf16, #tpu.memory_space<vmem>>, vector<1x28x128xbf16>
    %10 = vector.shape_cast %9 : vector<1x28x128xbf16> to vector<28x128xbf16>
    %cst_14 = arith.constant dense<0.000000e+00> : vector<72x128xf32>
    %11 = tpu.matmul %8, %10, %cst_14 {dimension_numbers = #tpu.dot_dimension_numbers<[1], [0], [0], [1], [0, 0, 1, 1], [], []>} : vector<72x28xbf16>, vector<28x128xbf16>, vector<72x128xf32> -> vector<72x128xf32>
    %12 = arith.addf %5, %11 : vector<72x128xf32>
    %c0_15 = arith.constant 0 : index
    %c0_16 = arith.constant 0 : index
    %c1_17 = arith.constant 1 : index
    %c0_18 = arith.constant 0 : index
    %c0_19 = arith.constant 0 : index
    %13 = vector.load %arg2[%c0_15, %c0_16, %c1_17, %c0_18, %c0_19] : memref<1x2x12x8x28xbf16, #tpu.memory_space<vmem>>, vector<1x1x9x8x28xbf16>
    %14 = vector.shape_cast %13 : vector<1x1x9x8x28xbf16> to vector<9x8x28xbf16>
    %15 = vector.shape_cast %14 : vector<9x8x28xbf16> to vector<72x28xbf16>
    %c2 = arith.constant 2 : index
    %c0_20 = arith.constant 0 : index
    %c0_21 = arith.constant 0 : index
    %16 = vector.load %arg3[%c2, %c0_20, %c0_21] : memref<7x28x128xbf16, #tpu.memory_space<vmem>>, vector<1x28x128xbf16>
    %17 = vector.shape_cast %16 : vector<1x28x128xbf16> to vector<28x128xbf16>
    %cst_22 = arith.constant dense<0.000000e+00> : vector<72x128xf32>
    %18 = tpu.matmul %15, %17, %cst_22 {dimension_numbers = #tpu.dot_dimension_numbers<[1], [0], [0], [1], [0, 0, 1, 1], [], []>} : vector<72x28xbf16>, vector<28x128xbf16>, vector<72x128xf32> -> vector<72x128xf32>
    %19 = arith.addf %12, %18 : vector<72x128xf32>
    %c0_23 = arith.constant 0 : index
    %c1_24 = arith.constant 1 : index
    %c1_25 = arith.constant 1 : index
    %c0_26 = arith.constant 0 : index
    %c0_27 = arith.constant 0 : index
    %20 = vector.load %arg2[%c0_23, %c1_24, %c1_25, %c0_26, %c0_27] : memref<1x2x12x8x28xbf16, #tpu.memory_space<vmem>>, vector<1x1x9x8x28xbf16>
    %21 = vector.shape_cast %20 : vector<1x1x9x8x28xbf16> to vector<9x8x28xbf16>
    %22 = vector.shape_cast %21 : vector<9x8x28xbf16> to vector<72x28xbf16>
    %c3 = arith.constant 3 : index
    %c0_28 = arith.constant 0 : index
    %c0_29 = arith.constant 0 : index
    %23 = vector.load %arg3[%c3, %c0_28, %c0_29] : memref<7x28x128xbf16, #tpu.memory_space<vmem>>, vector<1x28x128xbf16>
    %24 = vector.shape_cast %23 : vector<1x28x128xbf16> to vector<28x128xbf16>
    %cst_30 = arith.constant dense<0.000000e+00> : vector<72x128xf32>
    %25 = tpu.matmul %22, %24, %cst_30 {dimension_numbers = #tpu.dot_dimension_numbers<[1], [0], [0], [1], [0, 0, 1, 1], [], []>} : vector<72x28xbf16>, vector<28x128xbf16>, vector<72x128xf32> -> vector<72x128xf32>
    %26 = arith.addf %19, %25 : vector<72x128xf32>
    %c0_31 = arith.constant 0 : index
    %c0_32 = arith.constant 0 : index
    %c2_33 = arith.constant 2 : index
    %c0_34 = arith.constant 0 : index
    %c0_35 = arith.constant 0 : index
    %27 = vector.load %arg2[%c0_31, %c0_32, %c2_33, %c0_34, %c0_35] : memref<1x2x12x8x28xbf16, #tpu.memory_space<vmem>>, vector<1x1x9x8x28xbf16>
    %28 = vector.shape_cast %27 : vector<1x1x9x8x28xbf16> to vector<9x8x28xbf16>
    %29 = vector.shape_cast %28 : vector<9x8x28xbf16> to vector<72x28xbf16>
    %c4 = arith.constant 4 : index
    %c0_36 = arith.constant 0 : index
    %c0_37 = arith.constant 0 : index
    %30 = vector.load %arg3[%c4, %c0_36, %c0_37] : memref<7x28x128xbf16, #tpu.memory_space<vmem>>, vector<1x28x128xbf16>
    %31 = vector.shape_cast %30 : vector<1x28x128xbf16> to vector<28x128xbf16>
    %cst_38 = arith.constant dense<0.000000e+00> : vector<72x128xf32>
    %32 = tpu.matmul %29, %31, %cst_38 {dimension_numbers = #tpu.dot_dimension_numbers<[1], [0], [0], [1], [0, 0, 1, 1], [], []>} : vector<72x28xbf16>, vector<28x128xbf16>, vector<72x128xf32> -> vector<72x128xf32>
    %33 = arith.addf %26, %32 : vector<72x128xf32>
    %c0_39 = arith.constant 0 : index
    %c1_40 = arith.constant 1 : index
    %c2_41 = arith.constant 2 : index
    %c0_42 = arith.constant 0 : index
    %c0_43 = arith.constant 0 : index
    %34 = vector.load %arg2[%c0_39, %c1_40, %c2_41, %c0_42, %c0_43] : memref<1x2x12x8x28xbf16, #tpu.memory_space<vmem>>, vector<1x1x9x8x28xbf16>
    %35 = vector.shape_cast %34 : vector<1x1x9x8x28xbf16> to vector<9x8x28xbf16>
    %36 = vector.shape_cast %35 : vector<9x8x28xbf16> to vector<72x28xbf16>
    %c5 = arith.constant 5 : index
    %c0_44 = arith.constant 0 : index
    %c0_45 = arith.constant 0 : index
    %37 = vector.load %arg3[%c5, %c0_44, %c0_45] : memref<7x28x128xbf16, #tpu.memory_space<vmem>>, vector<1x28x128xbf16>
    %38 = vector.shape_cast %37 : vector<1x28x128xbf16> to vector<28x128xbf16>
    %cst_46 = arith.constant dense<0.000000e+00> : vector<72x128xf32>
    %39 = tpu.matmul %36, %38, %cst_46 {dimension_numbers = #tpu.dot_dimension_numbers<[1], [0], [0], [1], [0, 0, 1, 1], [], []>} : vector<72x28xbf16>, vector<28x128xbf16>, vector<72x128xf32> -> vector<72x128xf32>
    %40 = arith.addf %33, %39 : vector<72x128xf32>
    %c0_47 = arith.constant 0 : index
    %c0_48 = arith.constant 0 : index
    %c3_49 = arith.constant 3 : index
    %c0_50 = arith.constant 0 : index
    %c0_51 = arith.constant 0 : index
    %41 = vector.load %arg2[%c0_47, %c0_48, %c3_49, %c0_50, %c0_51] : memref<1x2x12x8x28xbf16, #tpu.memory_space<vmem>>, vector<1x1x9x8x28xbf16>
    %42 = vector.shape_cast %41 : vector<1x1x9x8x28xbf16> to vector<9x8x28xbf16>
    %43 = vector.shape_cast %42 : vector<9x8x28xbf16> to vector<72x28xbf16>
    %c6 = arith.constant 6 : index
    %c0_52 = arith.constant 0 : index
    %c0_53 = arith.constant 0 : index
    %44 = vector.load %arg3[%c6, %c0_52, %c0_53] : memref<7x28x128xbf16, #tpu.memory_space<vmem>>, vector<1x28x128xbf16>
    %45 = vector.shape_cast %44 : vector<1x28x128xbf16> to vector<28x128xbf16>
    %cst_54 = arith.constant dense<0.000000e+00> : vector<72x128xf32>
    %46 = tpu.matmul %43, %45, %cst_54 {dimension_numbers = #tpu.dot_dimension_numbers<[1], [0], [0], [1], [0, 0, 1, 1], [], []>} : vector<72x28xbf16>, vector<28x128xbf16>, vector<72x128xf32> -> vector<72x128xf32>
    %47 = arith.addf %40, %46 : vector<72x128xf32>
    %c0_55 = arith.constant 0 : index
    %c0_56 = arith.constant 0 : index
    %48 = vector.load %arg4[%c0_55, %c0_56] : memref<1x128xf32, #tpu.memory_space<vmem>>, vector<1x128xf32>
    %49 = vector.broadcast %48 : vector<1x128xf32> to vector<72x128xf32>
    %50 = arith.addf %47, %49 : vector<72x128xf32>
    %cst_57 = arith.constant 0.000000e+00 : f32
    %51 = vector.broadcast %cst_57 : f32 to vector<72x128xf32>
    %52 = arith.maximumf %50, %51 : vector<72x128xf32>
    %53 = vector.shape_cast %52 : vector<72x128xf32> to vector<9x8x128xf32>
    %54 = vector.extract_strided_slice %53 {offsets = [0, 0, 0], sizes = [1, 8, 128], strides = [1, 1, 1]} : vector<9x8x128xf32> to vector<1x8x128xf32>
    %55 = vector.shape_cast %54 : vector<1x8x128xf32> to vector<8x128xf32>
    %c0_i32 = arith.constant 0 : i32
    %56 = arith.cmpi sgt, %arg1, %c0_i32 : i32
    %57 = arith.extui %56 : i1 to i32
    %58 = arith.sitofp %57 : i32 to f32
    %59 = vector.broadcast %58 : f32 to vector<8x128xf32>
    %60 = arith.mulf %55, %59 : vector<8x128xf32>
    %61 = vector.extract_strided_slice %53 {offsets = [1, 0, 0], sizes = [1, 8, 128], strides = [1, 1, 1]} : vector<9x8x128xf32> to vector<1x8x128xf32>
    %62 = vector.shape_cast %61 : vector<1x8x128xf32> to vector<8x128xf32>
    %63 = vector.extract_strided_slice %53 {offsets = [2, 0, 0], sizes = [1, 8, 128], strides = [1, 1, 1]} : vector<9x8x128xf32> to vector<1x8x128xf32>
    %64 = vector.shape_cast %63 : vector<1x8x128xf32> to vector<8x128xf32>
    %65 = arith.maximumf %60, %62 : vector<8x128xf32>
    %66 = arith.maximumf %65, %64 : vector<8x128xf32>
    %67 = vector.extract_strided_slice %53 {offsets = [2, 0, 0], sizes = [1, 8, 128], strides = [1, 1, 1]} : vector<9x8x128xf32> to vector<1x8x128xf32>
    %68 = vector.shape_cast %67 : vector<1x8x128xf32> to vector<8x128xf32>
    %69 = vector.extract_strided_slice %53 {offsets = [3, 0, 0], sizes = [1, 8, 128], strides = [1, 1, 1]} : vector<9x8x128xf32> to vector<1x8x128xf32>
    %70 = vector.shape_cast %69 : vector<1x8x128xf32> to vector<8x128xf32>
    %71 = vector.extract_strided_slice %53 {offsets = [4, 0, 0], sizes = [1, 8, 128], strides = [1, 1, 1]} : vector<9x8x128xf32> to vector<1x8x128xf32>
    %72 = vector.shape_cast %71 : vector<1x8x128xf32> to vector<8x128xf32>
    %73 = arith.maximumf %68, %70 : vector<8x128xf32>
    %74 = arith.maximumf %73, %72 : vector<8x128xf32>
    %75 = vector.extract_strided_slice %53 {offsets = [4, 0, 0], sizes = [1, 8, 128], strides = [1, 1, 1]} : vector<9x8x128xf32> to vector<1x8x128xf32>
    %76 = vector.shape_cast %75 : vector<1x8x128xf32> to vector<8x128xf32>
    %77 = vector.extract_strided_slice %53 {offsets = [5, 0, 0], sizes = [1, 8, 128], strides = [1, 1, 1]} : vector<9x8x128xf32> to vector<1x8x128xf32>
    %78 = vector.shape_cast %77 : vector<1x8x128xf32> to vector<8x128xf32>
    %79 = vector.extract_strided_slice %53 {offsets = [6, 0, 0], sizes = [1, 8, 128], strides = [1, 1, 1]} : vector<9x8x128xf32> to vector<1x8x128xf32>
    %80 = vector.shape_cast %79 : vector<1x8x128xf32> to vector<8x128xf32>
    %81 = arith.maximumf %76, %78 : vector<8x128xf32>
    %82 = arith.maximumf %81, %80 : vector<8x128xf32>
    %83 = vector.extract_strided_slice %53 {offsets = [6, 0, 0], sizes = [1, 8, 128], strides = [1, 1, 1]} : vector<9x8x128xf32> to vector<1x8x128xf32>
    %84 = vector.shape_cast %83 : vector<1x8x128xf32> to vector<8x128xf32>
    %85 = vector.extract_strided_slice %53 {offsets = [7, 0, 0], sizes = [1, 8, 128], strides = [1, 1, 1]} : vector<9x8x128xf32> to vector<1x8x128xf32>
    %86 = vector.shape_cast %85 : vector<1x8x128xf32> to vector<8x128xf32>
    %87 = vector.extract_strided_slice %53 {offsets = [8, 0, 0], sizes = [1, 8, 128], strides = [1, 1, 1]} : vector<9x8x128xf32> to vector<1x8x128xf32>
    %88 = vector.shape_cast %87 : vector<1x8x128xf32> to vector<8x128xf32>
    %89 = arith.maximumf %84, %86 : vector<8x128xf32>
    %90 = arith.maximumf %89, %88 : vector<8x128xf32>
    %91 = vector.shape_cast %66 : vector<8x128xf32> to vector<1x8x128xf32>
    %92 = vector.shape_cast %74 : vector<8x128xf32> to vector<1x8x128xf32>
    %93 = vector.shape_cast %82 : vector<8x128xf32> to vector<1x8x128xf32>
    %94 = vector.shape_cast %90 : vector<8x128xf32> to vector<1x8x128xf32>
    %95 = tpu.concatenate %91, %92, %93, %94 in 0 : vector<1x8x128xf32>, vector<1x8x128xf32>, vector<1x8x128xf32>, vector<1x8x128xf32> -> vector<4x8x128xf32>
    %c0_i32_58 = arith.constant 0 : i32
    %96 = arith.sitofp %c0_i32_58 : i32 to f32
    %97 = vector.broadcast %96 : f32 to vector<4x1x128xf32>
    %98 = tpu.concatenate %97, %95 in 1 : vector<4x1x128xf32>, vector<4x8x128xf32> -> vector<4x9x128xf32>
    %99 = vector.extract_strided_slice %98 {offsets = [0, 0, 0], sizes = [4, 8, 128], strides = [1, 1, 1]} : vector<4x9x128xf32> to vector<4x8x128xf32>
    %100 = vector.shape_cast %99 : vector<4x8x128xf32> to vector<4x4x2x128xf32>
    %cst_59 = arith.constant dense<0xFF800000> : vector<4x4x128xf32>
    %101 = vector.multi_reduction <maximumf>, %100, %cst_59 [2] : vector<4x4x2x128xf32> to vector<4x4x128xf32>
    %102 = vector.extract_strided_slice %98 {offsets = [0, 1, 0], sizes = [4, 8, 128], strides = [1, 1, 1]} : vector<4x9x128xf32> to vector<4x8x128xf32>
    %103 = vector.shape_cast %102 : vector<4x8x128xf32> to vector<4x4x2x128xf32>
    %cst_60 = arith.constant dense<0xFF800000> : vector<4x4x128xf32>
    %104 = vector.multi_reduction <maximumf>, %103, %cst_60 [2] : vector<4x4x2x128xf32> to vector<4x4x128xf32>
    %105 = arith.maximumf %101, %104 : vector<4x4x128xf32>
    %106 = arith.truncf %105 : vector<4x4x128xf32> to vector<4x4x128xbf16>
    %c0_61 = arith.constant 0 : index
    %c0_62 = arith.constant 0 : index
    %c0_63 = arith.constant 0 : index
    %c0_64 = arith.constant 0 : index
    %107 = vector.load %arg5[%c0_61, %c0_62, %c0_63, %c0_64] : memref<1x4x4x128xbf16, #tpu.memory_space<vmem>>, vector<1x4x4x128xbf16>
    %108 = vector.shape_cast %107 : vector<1x4x4x128xbf16> to vector<4x4x128xbf16>
    %109 = vector.shape_cast %106 : vector<4x4x128xbf16> to vector<1x4x4x128xbf16>
    tpu.vector_store %arg5[%c0_61, %c0_62, %c0_63, %c0_64], %109 {strides = array<i32>} : memref<1x4x4x128xbf16, #tpu.memory_space<vmem>>, vector<1x4x4x128xbf16>,
    return
  }
  func.func @transform_0(%arg0: i32, %arg1: i32) -> (i32, i32, i32, i32, i32) {
    %c1_i32 = arith.constant 1 : i32
    %0 = arith.muli %arg0, %c1_i32 : i32
    %1 = arith.addi %0, %arg1 : i32
    %c0_i32 = arith.constant 0 : i32
    %c0_i32_0 = arith.constant 0 : i32
    %c0_i32_1 = arith.constant 0 : i32
    %c0_i32_2 = arith.constant 0 : i32
    %c0_i32_3 = arith.constant 0 : i32
    return %1, %c0_i32, %c0_i32_0, %c0_i32_1, %c0_i32_2 : i32, i32, i32, i32, i32
  }
  func.func @transform_1(%arg0: i32, %arg1: i32) -> (i32, i32, i32) {
    %c0_i32 = arith.constant 0 : i32
    %c0_i32_0 = arith.constant 0 : i32
    %c0_i32_1 = arith.constant 0 : i32
    %c0_i32_2 = arith.constant 0 : i32
    return %c0_i32, %c0_i32_0, %c0_i32_1 : i32, i32, i32
  }
  func.func @transform_2(%arg0: i32, %arg1: i32) -> (i32, i32) {
    %c0_i32 = arith.constant 0 : i32
    %c0_i32_0 = arith.constant 0 : i32
    %c0_i32_1 = arith.constant 0 : i32
    return %c0_i32, %c0_i32_0 : i32, i32
  }
  func.func @transform_3(%arg0: i32, %arg1: i32) -> (i32, i32, i32, i32) {
    %c0_i32 = arith.constant 0 : i32
    %c0_i32_0 = arith.constant 0 : i32
    %c0_i32_1 = arith.constant 0 : i32
    return %arg0, %arg1, %c0_i32, %c0_i32_0 : i32, i32, i32, i32
  }
}

</mosaic_0001>

<bundles_post_ra>
// kernel: common_block_nhwc.1
= control target key start
LH: loop header
LB: loop body
LE: loop exit
PB: predicated region body
PF: predicated region fallthrough
CT: control target
= control target key end

     0   :  { %8 = vsyncpa [#allocation3], 0  ;;  %s3367_s0 = inlined_call_operand.vmem [shape: bf16[2,2,12,8,28], index: 0, kind: input, shape index: {}]   ;;  %s3368_s1 = inlined_call_operand.vmem [shape: bf16[7,28,128], index: 1, kind: input, shape index: {}]   ;;  %s3369_s2 = inlined_call_operand.vmem [shape: f32[1,128], index: 2, kind: input, shape index: {}]   ;;  %s3370_s3 = inlined_call_operand.hbm [shape: bf16[2,4,4,128], index: 3, kind: output, shape index: {}]  }
   0x1   :  { %10 = vsyncpa [#allocation3 + $0x1], 0  ;;  %s2744_s12 = smov 0   ;;  %s2746_s13 = smov 0  }
   0x2   :  { %s2748_s14 = smov 0   ;;  %s2750_s15 = smov 0  }
   0x3   :  { %s2752_s16 = smov 0   ;;  %s2754_s17 = smov 0  }
   0x4 LB: > { %s2123_s18 = sadd.s32 4294967295, %s2716_s17   ;;  %s2124_s19 = sadd.s32 4294967294, %s2716_s17   ;;  %s2716_s17 = sphi %s2754_s17, %s16_s17   ;;  %s2712_s16 = sphi %s2752_s16, %s3381_s16   ;;  %s2708_s15 = sphi %s2750_s15, %s3380_s15   ;;  %s2704_s14 = sphi %s2748_s14, %s3379_s14   ;;  %s2700_s13 = sphi %s2746_s13, %s3378_s13   ;;  %s2696_s12 = sphi %s2744_s12, %s3377_s12  }
   0x5   : > { %s28_s20 = sadd.s32 1, %s2712_s16  ;;  %s107_s21 = sadd.s32 1, %s2704_s14 }
   0x6   : > { %p30_p0 = scmp.ge.s32.totalorder %s28_s20, 2  ;;  %p117_p1 = scmp.ne.s32.totalorder %s2704_s14, %s2700_s13 }
   0x7   : > { %p118_p2 = scmp.eq.s32.totalorder %s2123_s18, 1  ;;  %p123_p3 = scmp.ne.s32.totalorder %s2700_s13, %s2696_s12 }
   0x8   : > { %s3383_s20 = smov (%p30_p0, %s28_s20), 0  ;;  %p124_p5 = scmp.eq.s32.totalorder %s2124_s19, 1 }
   0x9   : > { %p2784_p4 = por %p118_p2, %p117_p1  ;;  %s102_s23 = ssub.s32 %s2712_s16, %s3383_s20 }
   0xa   : > { %p2127_p6 = scmp.ge.s32.totalorder %s2716_s17, 1  ;;  %p105_p7 = scmp.eq.s32.totalorder %s102_s23, 0 }
   0xb   : > { %p2791_p8 = por %p124_p5, %p123_p3  ;;  %p158_p9 = scmp.lt.s32.totalorder %s2716_s17, 3 }
   0xc   : > { %s2797_s25 = scalar_select %p105_p7, %s2704_s14, %s107_s21  }
   0xd   : > { %p159_p10 = pnand %p2127_p6, %p158_p9 }
   0xe   : > { %v2589_v0 = vld [vmem:[%s3368_s1 + $0x10] sm:$0xff] (!%p159_p10)   ;;  %v2718_v1 = vmov (!%p159_p10), 0.0   ;;  %v2590_v2 = vld [vmem:[%s3368_s1 + $0x18] sm:$0x3f] (!%p159_p10)   ;;  %vm270_vm0 = vcmask (!%p159_p10), 1045504   ;;  %p184_p11 = scmp.lt.s32.totalorder (!%p159_p10), %s2708_s15, 1 }
   0xf   : > { %162 = sbr.rel (%p159_p10) target bundleno = 498 (0x1f2), region = 32  ;;  %2356 = vmatprep.subr.bf16.mxu0 (!%p159_p10), %v2718_v1  ;;  %2524 = vmatprep.subr.bf16.mxu1 (!%p159_p10), %v2718_v1  ;;  %v272_v3 = vsel (!%p159_p10), %vm270_vm0, %v2590_v2, 0  ;;  %vm2719_vm1 = vmmov (!%p159_p10), 0   ;;  %vm254_vm2 = vcmask (!%p159_p10), 228352   ;;  %v2593_v4 = vld [vmem:[%s3368_s1 + $0x20] sm:$0xff] (!%p159_p10)   ;;  %v2601_v15 = vld [vmem:[%s3368_s1 + $0x30] sm:$0xff] (!%p159_p10)  }
  0x10   : > { %2357 = vmatpush3.bf16.msra.mxu0 (!%p159_p10), %v2589_v0  ;;  %2526 = vmatpush3.bf16.msra.mxu1 (!%p159_p10), %v2589_v0  ;;  %v2594_v5 = vld [vmem:[%s3368_s1] sm:$0xff] (!%p159_p10)   ;;  %v2598_v6 = vld [vmem:[%s3368_s1 + $0x28] sm:$0x3f] (!%p159_p10)   ;;  %v2609_v17 = vld [vmem:[%s3368_s1 + $0x38] sm:$0x3f] (!%p159_p10)   ;;  %vm1494_vm3 = vcmask (!%p159_p10), 1042434  }
  0x11   : > { %2358 = vmatprep.subr.bf16.mxu0 (!%p159_p10), %v2718_v1  ;;  %2525 = vmatprep.subr.bf16.mxu1 (!%p159_p10), %v2718_v1  ;;  %v2597_v9 = vld [vmem:[%s3368_s1 + $0x8] sm:$0x3f] (!%p159_p10)   ;;  %v535_v10 = vsel (!%p159_p10), %vm270_vm0, %v2598_v6, 0  ;;  %v2604_v18 = vld [vmem:[%s3368_s1 + $0x40] sm:$0xff] (!%p159_p10)   ;;  %v683_v19 = vsel (!%p159_p10), %vm270_vm0, %v2609_v17, 0  ;;  %v2615_v32 = vld [vmem:[%s3368_s1 + $0x50] sm:$0xff] (!%p159_p10)  }
  0x12   : > { %2360 = vmatprep.mubr.msk.bf16.mxu0 (!%p159_p10), %vm2719_vm1, %v2718_v1  ;;  %2372 = vmatprep.mubr.msk.bf16.mxu1 (!%p159_p10), %vm2719_vm1, %v2718_v1  ;;  %v396_v12 = vsel (!%p159_p10), %vm270_vm0, %v2597_v9, 0  ;;  %v2610_v22 = vld [vmem:[%s3368_s1 + $0x48] sm:$0x3f] (!%p159_p10)   ;;  %v2623_v33 = vld [vmem:[%s3368_s1 + $0x58] sm:$0x3f] (!%p159_p10)   ;;  %v2618_v37 = vld [vmem:[%s3368_s1 + $0x60] sm:$0xff] (!%p159_p10)  }
  0x13   : > { %v831_v23 = vsel (!%p159_p10), %vm270_vm0, %v2610_v22, 0  ;;  %v979_v34 = vsel (!%p159_p10), %vm270_vm0, %v2623_v33, 0  ;;  %v2624_v38 = vld [vmem:[%s3368_s1 + $0x68] sm:$0x3f] (!%p159_p10)   ;;  %vm1260_vm4 = vcmask (!%p159_p10), 1040384   ;;  %vm1496_vm6 = vcmask (!%p159_p10), 1044484  }
  0x14   : > { %2359 = vmatpush3.bf16.msra.mxu0 (!%p159_p10), %v272_v3  ;;  %2527 = vmatpush3.bf16.msra.mxu1 (!%p159_p10), %v272_v3  ;;  %v1127_v39 = vsel (!%p159_p10), %vm270_vm0, %v2624_v38, 0  ;;  %vm3030_vm5 = vmor (!%p159_p10), %vm1260_vm4, %vm1494_vm3  ;;  %vm1353_vm7 = vcmask (!%p159_p10), 1041408   ;;  %vm1498_vm9 = vcmask (!%p159_p10), 1046534   ;;  %vm1969_vm11 = vcmask (!%p159_p10), 1041409   ;;  %s180_s27 = sand.u32 (!%p159_p10), 1, %s2700_s13   ;;  %s2721_s10 = smov (!%p159_p10), [#allocation2]  }
  0x15   : > { %2404 = vmatprep.subr.bf16.mxu0 (!%p159_p10), %v2718_v1  ;;  %2380 = vmatprep.subr.bf16.mxu1 (!%p159_p10), %v2718_v1  ;;  %vm1497_vm8 = vmor (!%p159_p10), %vm3030_vm5, %vm1496_vm6  ;;  %vm1974_vm12 = vcmask (!%p159_p10), 1043459   ;;  %s2128_s28 = sshll.u32 (!%p159_p10), %s180_s27, 3  ;;  %s2642_s11 = sshll.u32 (!%p159_p10), %s2721_s10, 4  ;;  %s2643_s11 = int_to_ptr.vmem [resolvable:$false] %s2642_s11 }
  0x16   : > { %s185_s30 = scalar_select %p184_p11, %s2708_s15, 1  ;;  %vm3052_vm10 = vmor %vm1497_vm8, %vm1498_vm9 }
  0x17   : > { %s3285_s29 = scalar_lea.vmem [#allocation2], %s2128_s28  ;;  %s2644_s18 = scalar_lea.vmem %s2643_s11, 256 }
  0x18   : > { %s2528_s4 = smul.u32 96, %s185_s30  ;;  %s2306_s30 = sshll.u32 %s2708_s15, 7 }
  0x19   : > { %s3314_s7 = scalar_lea.hbm %s3370_s3, %s2306_s30  ;;  %s3321_s15 = scalar_lea.sflag [#allocation3], %s180_s27 }
  0x1a   : > { %s2824_s9 = scalar_lea.vmem %s3367_s0, %s2528_s4  ;;  %s2050_s4 = sshll.u32 %s3285_s29, 4  ;;  %s3316_s4 = int_to_ptr.vmem [resolvable:$true] %s2050_s4 }
  0x1b   : > { %v2591_v7 = vld [vmem:[%s2824_s9 + $0x30] sm:$0xff]   ;;  %v2592_v8 = vld [vmem:[%s2824_s9 + $0x48] sm:$0xff]   ;;  %v2595_v11 = vld [vmem:[%s2824_s9 + $0x38] sm:$0xff]   ;;  %s2638_s8 = scalar_lea.vmem %s3316_s4, 128  ;;  %p2645_p1 = scmp.lt.s32.totalorder %s3316_s4, %s2643_s11 }
  0x1c   : > { %2361 = vmatmul.mubr.msk.bf16.vlgmr.msra.gmra.mrb[0].mxu0 %vm254_vm2, %v2591_v7  ;;  %2373 = vmatmul.mubr.msk.bf16.vlgmr.msra.gmra.mrb[0].mxu1 %vm254_vm2, %v2592_v8  ;;  %v2596_v13 = vld [vmem:[%s2824_s9 + $0x50] ss:$0 sps:$4 sm:$0xff]   ;;  %v2599_v14 = vld [vmem:[%s2824_s9 + $0x40] sm:$0xff]   ;;  %v2602_v21 = vld [vmem:[%s2824_s9 + $0x8] sm:$0xff]   ;;  %p2639_p12 = scmp.ne.s32.totalorder %s3316_s4, %s2638_s8  ;;  %p2646_p2 = scmp.lt.s32.totalorder %s2644_s18, %s2638_s8 }
  0x1d   : > { %2405 = vmatpush3.bf16.msra.mxu0 %v2593_v4  ;;  %2364 = vmatprep.mubr.msk.bf16.mxu0 %vm2719_vm1, %v2718_v1  ;;  %v2600_v16 = vld [vmem:[%s2824_s9] sm:$0xff]   ;;  %v2606_v24 = vld [vmem:[%s2824_s9 + $0xc] sm:$0xff]   ;;  %v2608_v26 = vld [vmem:[%s2824_s9 + $0x14] sm:$0xff]  }
  0x1e   : > { %2376 = vmatprep.mubr.msk.bf16.mxu1 %vm2719_vm1, %v2718_v1  ;;  %2381 = vmatpush3.bf16.msra.mxu1 %v2594_v5  ;;  %v2603_v20 = vld [vmem:[%s2824_s9 + $0x4] sm:$0xff]   ;;  %v2605_v25 = vld [vmem:[%s2824_s9 + $0x10] sm:$0xff]   ;;  %v2607_v27 = vld [vmem:[%s2824_s9 + $0x18] sm:$0xff]   ;;  %p2640_p13 = pnand %p2639_p12, %p2784_p4  ;;  %p2647_p3 = por %p2646_p2, %p2645_p1 }
  0x1f   : > { %2406 = vmatprep.subr.bf16.mxu0 %v2718_v1  ;;  %2382 = vmatprep.subr.bf16.mxu1 %v2718_v1  ;;  %v2612_v28 = vld [vmem:[%s2824_s9 + $0x1c] sm:$0xff]   ;;  %v2613_v30 = vld [vmem:[%s2824_s9 + $0x24] ss:$0 sps:$4 sm:$0xff]   ;;  %v2614_v31 = vld [vmem:[%s2824_s9 + $0x34] sm:$0xff]  }
  0x20   : > { %v2611_v29 = vld [vmem:[%s2824_s9 + $0x20] ss:$0 sps:$4 sm:$0xff]   ;;  %v2617_v35 = vld [vmem:[%s2824_s9 + $0x8] sm:$0xff]   ;;  %v2620_v40 = vld [vmem:[%s2824_s9 + $0x10] sm:$0xff]   ;;  %p2641_p0 = pneg %p2640_p13 }
  0x21   : > { %2407 = vmatpush3.bf16.msra.mxu0 %v535_v10  ;;  %v2616_v36 = vld [vmem:[%s2824_s9 + $0x3c] sm:$0xff]   ;;  %v2619_v41 = vld [vmem:[%s2824_s9 + $0x44] sm:$0xff]   ;;  %v2621_v43 = vld [vmem:[%s2824_s9 + $0x4c] sm:$0xff]  }
  0x22   : > { %2452 = vmatprep.subr.bf16.mxu0 %v2718_v1  ;;  %2383 = vmatpush3.bf16.msra.mxu1 %v396_v12  ;;  %v2622_v42 = vld [vmem:[%s2824_s9 + $0x18] sm:$0xff]   ;;  %v2626_v44 = vld [vmem:[%s2824_s9 + $0x20] sm:$0xff]   ;;  %v2625_v45 = vld [vmem:[%s2824_s9 + $0x54] ss:$0 sps:$4 sm:$0xff]   ;;  %p2648_p5 = pnand %p2647_p3, %p2641_p0 }
  0x23   : > { %2428 = vmatprep.subr.bf16.mxu1 %v2718_v1  ;;  %v2627_v46 = vld [vmem:[%s2824_s9 + $0x28] ss:$0 sps:$4 sm:$0xff]   ;;  %v2628_v47 = vld [vmem:[%s2824_s9 + $0x38] sm:$0xff]   ;;  %v2630_v48 = vld [vmem:[%s2824_s9 + $0xc] sm:$0xff]  }
  0x24   : > { %2365 = vmatmul.mubr.msk.bf16.gmra.mrb[4].mxu0 %vm254_vm2, %v2595_v11  ;;  %2377 = vmatmul.mubr.msk.bf16.gmra.mrb[4].mxu1 %vm254_vm2, %v2596_v13  ;;  %v2629_v49 = vld [vmem:[%s2824_s9 + $0x40] sm:$0xff]   ;;  %v2632_v50 = vld [vmem:[%s2824_s9 + $0x14] sm:$0xff]   ;;  %v2631_v51 = vld [vmem:[%s2824_s9 + $0x48] sm:$0xff]  }
  0x25   : > { %2368 = vmatprep.mubr.msk.bf16.mxu0 %vm2719_vm1, %v2718_v1  ;;  %2384 = vmatprep.mubr.msk.bf16.mxu1 %vm2719_vm1, %v2718_v1  ;;  %v2634_v52 = vld [vmem:[%s2824_s9 + $0x1c] sm:$0xff]   ;;  %v2633_v53 = vld [vmem:[%s2824_s9 + $0x50] sm:$0xff]   ;;  %v2636_v54 = vld [vmem:[%s2824_s9 + $0x24] sm:$0xff]  }
  0x26   : > { %v2635_v55 = vld [vmem:[%s2824_s9 + $0x58] ss:$0 sps:$4 sm:$0xff]   ;;  %v2637_v56 = vld [vmem:[%s2824_s9 + $0x2c] ss:$0 sps:$4 sm:$0xff]  }
  0x2c   : > { %2369 = vmatmul.mubr.msk.bf16.gmra.mrb[8].mxu0 %vm254_vm2, %v2599_v14  ;;  %2385 = vmatmul.mubr.msk.bf16.vlgmr.msra.gmra.mrb[8].mxu1 %vm254_vm2, %v2600_v16 }
  0x2d   : > { %2408 = vmatprep.mubr.msk.bf16.mxu0 %vm2719_vm1, %v2718_v1  ;;  %2388 = vmatprep.mubr.msk.bf16.mxu1 %vm2719_vm1, %v2718_v1 }
  0x2e   : > { %2429 = vmatpush3.bf16.msra.mxu1 %v2601_v15 }
  0x2f   : > { %2430 = vmatprep.subr.bf16.mxu1 %v2718_v1 }
  0x32   : > { %2431 = vmatpush3.bf16.msra.mxu1 %v683_v19 }
  0x33   : > { %2476 = vmatprep.subr.bf16.mxu1 %v2718_v1 }
  0x34   : > { %2409 = vmatmul.mubr.msk.bf16.vlgmr.msra.gmra.mrb[12].mxu0 %vm254_vm2, %v2603_v20  ;;  %2389 = vmatmul.mubr.msk.bf16.gmra.mrb[12].mxu1 %vm254_vm2, %v2602_v21 }
  0x35   : > { %2453 = vmatpush3.bf16.msra.mxu0 %v2604_v18  ;;  %2392 = vmatprep.mubr.msk.bf16.mxu1 %vm2719_vm1, %v2718_v1 }
  0x36   : > { %2412 = vmatprep.mubr.msk.bf16.mxu0 %vm2719_vm1, %v2718_v1  ;;  %2454 = vmatprep.subr.bf16.mxu0 %v2718_v1 }
  0x39   : > { %2455 = vmatpush3.bf16.msra.mxu0 %v831_v23 }
  0x3a   : > { %2500 = vmatprep.subr.bf16.mxu0 %v2718_v1 }
  0x3c   : > { %2413 = vmatmul.mubr.msk.bf16.gmra.mrb[16].mxu0 %vm254_vm2, %v2606_v24  ;;  %2393 = vmatmul.mubr.msk.bf16.gmra.mrb[16].mxu1 %vm254_vm2, %v2605_v25 }
  0x3d   : > { %2416 = vmatprep.mubr.msk.bf16.mxu0 %vm2719_vm1, %v2718_v1  ;;  %2396 = vmatprep.mubr.msk.bf16.mxu1 %vm2719_vm1, %v2718_v1 }
  0x44   : > { %2417 = vmatmul.mubr.msk.bf16.gmra.mrb[20].mxu0 %vm254_vm2, %v2608_v26  ;;  %2397 = vmatmul.mubr.msk.bf16.gmra.mrb[20].mxu1 %vm254_vm2, %v2607_v27 }
  0x45   : > { %2420 = vmatprep.mubr.msk.bf16.mxu0 %vm2719_vm1, %v2718_v1  ;;  %2400 = vmatprep.mubr.msk.bf16.mxu1 %vm2719_vm1, %v2718_v1 }
  0x4c   : > { %2421 = vmatmul.mubr.msk.bf16.gmra.mrb[24].mxu0 %vm254_vm2, %v2612_v28  ;;  %2401 = vmatmul.mubr.msk.bf16.gmra.mrb[24].mxu1 %vm254_vm2, %v2611_v29 }
  0x4d   : > { %2424 = vmatprep.mubr.msk.bf16.mxu0 %vm2719_vm1, %v2718_v1  ;;  %2432 = vmatprep.mubr.msk.bf16.mxu1 %vm2719_vm1, %v2718_v1 }
  0x54   : > { %2425 = vmatmul.mubr.msk.bf16.gmra.mrb[28].mxu0 %vm254_vm2, %v2613_v30  ;;  %2433 = vmatmul.mubr.msk.bf16.vlgmr.msra.gmra.mrb[28].mxu1 %vm254_vm2, %v2614_v31 }
  0x55   : > { %2456 = vmatprep.mubr.msk.bf16.mxu0 %vm2719_vm1, %v2718_v1  ;;  %2436 = vmatprep.mubr.msk.bf16.mxu1 %vm2719_vm1, %v2718_v1 }
  0x56   : > { %2477 = vmatpush3.bf16.msra.mxu1 %v2615_v32 }
  0x57   : > { %2478 = vmatprep.subr.bf16.mxu1 %v2718_v1 }
  0x5a   : > { %2479 = vmatpush3.bf16.msra.mxu1 %v979_v34 }
  0x5c   : > { %2457 = vmatmul.mubr.msk.bf16.vlgmr.msra.gmra.mrb[32].mxu0 %vm254_vm2, %v2617_v35  ;;  %2437 = vmatmul.mubr.msk.bf16.gmra.mrb[32].mxu1 %vm254_vm2, %v2616_v36 }
  0x5d   : > { %2501 = vmatpush3.bf16.msra.mxu0 %v2618_v37  ;;  %2440 = vmatprep.mubr.msk.bf16.mxu1 %vm2719_vm1, %v2718_v1 }
  0x5e   : > { %2460 = vmatprep.mubr.msk.bf16.mxu0 %vm2719_vm1, %v2718_v1  ;;  %2502 = vmatprep.subr.bf16.mxu0 %v2718_v1 }
  0x61   : > { %2503 = vmatpush3.bf16.msra.mxu0 %v1127_v39 }
  0x64   : > { %2461 = vmatmul.mubr.msk.bf16.gmra.mrb[36].mxu0 %vm254_vm2, %v2620_v40  ;;  %2441 = vmatmul.mubr.msk.bf16.gmra.mrb[36].mxu1 %vm254_vm2, %v2619_v41 }
  0x65   : > { %2464 = vmatprep.mubr.msk.bf16.mxu0 %vm2719_vm1, %v2718_v1  ;;  %2444 = vmatprep.mubr.msk.bf16.mxu1 %vm2719_vm1, %v2718_v1 }
  0x6c   : > { %2465 = vmatmul.mubr.msk.bf16.gmra.mrb[40].mxu0 %vm254_vm2, %v2622_v42  ;;  %2445 = vmatmul.mubr.msk.bf16.gmra.mrb[40].mxu1 %vm254_vm2, %v2621_v43 }
  0x6d   : > { %2468 = vmatprep.mubr.msk.bf16.mxu0 %vm2719_vm1, %v2718_v1  ;;  %2448 = vmatprep.mubr.msk.bf16.mxu1 %vm2719_vm1, %v2718_v1 }
  0x74   : > { %2469 = vmatmul.mubr.msk.bf16.gmra.mrb[44].mxu0 %vm254_vm2, %v2626_v44  ;;  %2449 = vmatmul.mubr.msk.bf16.gmra.mrb[44].mxu1 %vm254_vm2, %v2625_v45 }
  0x75   : > { %2472 = vmatprep.mubr.msk.bf16.mxu0 %vm2719_vm1, %v2718_v1  ;;  %2480 = vmatprep.mubr.msk.bf16.mxu1 %vm2719_vm1, %v2718_v1 }
  0x7c   : > { %2473 = vmatmul.mubr.msk.bf16.gmra.mrb[48].mxu0 %vm254_vm2, %v2627_v46  ;;  %2481 = vmatmul.mubr.msk.bf16.vlgmr.msra.gmra.mrb[48].mxu1 %vm254_vm2, %v2628_v47 }
  0x7d   : > { %2504 = vmatprep.mubr.msk.bf16.mxu0 %vm2719_vm1, %v2718_v1  ;;  %2484 = vmatprep.mubr.msk.bf16.mxu1 %vm2719_vm1, %v2718_v1 }
  0x84   : > { %2505 = vmatmul.mubr.msk.bf16.vlgmr.msra.gmra.mrb[52].mxu0 %vm254_vm2, %v2630_v48  ;;  %2485 = vmatmul.mubr.msk.bf16.gmra.mrb[52].mxu1 %vm254_vm2, %v2629_v49 }
  0x85   : > { %2508 = vmatprep.mubr.msk.bf16.mxu0 %vm2719_vm1, %v2718_v1  ;;  %2488 = vmatprep.mubr.msk.bf16.mxu1 %vm2719_vm1, %v2718_v1 }
  0x8c   : > { %2509 = vmatmul.mubr.msk.bf16.gmra.mrb[56].mxu0 %vm254_vm2, %v2632_v50  ;;  %2489 = vmatmul.mubr.msk.bf16.gmra.mrb[56].mxu1 %vm254_vm2, %v2631_v51 }
  0x8d   : > { %2512 = vmatprep.mubr.msk.bf16.mxu0 %vm2719_vm1, %v2718_v1  ;;  %2492 = vmatprep.mubr.msk.bf16.mxu1 %vm2719_vm1, %v2718_v1 }
  0x94   : > { %2513 = vmatmul.mubr.msk.bf16.gmra.mrb[60].mxu0 %vm254_vm2, %v2634_v52  ;;  %2493 = vmatmul.mubr.msk.bf16.gmra.mrb[60].mxu1 %vm254_vm2, %v2633_v53 }
  0x95   : > { %2516 = vmatprep.mubr.msk.bf16.mxu0 %vm2719_vm1, %v2718_v1  ;;  %2496 = vmatprep.mubr.msk.bf16.mxu1 %vm2719_vm1, %v2718_v1 }
  0x9c   : > { %2517 = vmatmul.mubr.msk.bf16.gmra.mrb[64].mxu0 %vm254_vm2, %v2636_v54  ;;  %2497 = vmatmul.mubr.msk.bf16.gmra.mrb[64].mxu1 %vm254_vm2, %v2635_v55 }
  0x9d   : > { %2520 = vmatprep.mubr.msk.bf16.mxu0 %vm2719_vm1, %v2718_v1 }
  0xa4   : > { %2521 = vmatmul.mubr.msk.bf16.gmra.mrb[68].mxu0 %vm254_vm2, %v2637_v56 }
  0xef   : > { %v308_v57 = vpop.f32.mrb[0].mxu0  ;;  %v332_v59 = vpop.f32.mrb[0].mxu1 }
  0xf0   : > { %v2362_v58 = vpop.f32.mrb[1].mxu0  ;;  %v2374_v61 = vpop.f32.mrb[1].mxu1 }
  0xf1   : > { %v311_v60 = vpop.f32.mrb[2].mxu0  ;;  %v335_v63 = vpop.f32.mrb[2].mxu1 }
  0xf2   : > { %v2363_v62 = vpop.f32.mrb[3].mxu0  ;;  %v2375_v0 = vpop.f32.mrb[3].mxu1 }
  0xf7   : > { %v316_v2 = vpop.f32.mrb[4].mxu0  ;;  %v340_v4 = vpop.f32.mrb[4].mxu1 }
  0xf8   : > { %v2366_v3 = vpop.f32.mrb[5].mxu0  ;;  %v2378_v6 = vpop.f32.mrb[5].mxu1 }
  0xf9   : > { %v319_v5 = vpop.f32.mrb[6].mxu0  ;;  %v343_v8 = vpop.f32.mrb[6].mxu1 }
  0xfa   : > { %v2367_v7 = vpop.f32.mrb[7].mxu0  ;;  %v2379_v9 = vpop.f32.mrb[7].mxu1 }
  0xff   : > { %v324_v1 = vpop.f32.mrb[8].mxu0  ;;  %v432_v10 = vpop.f32.mrb[8].mxu1 }
 0x100   : > { %v2370_v11 = vpop.f32.mrb[9].mxu0  ;;  %v433_v12 = vadd.f32 %v432_v10, %v308_v57  ;;  %v2386_v13 = vpop.f32.mrb[9].mxu1 }
 0x101   : > { %v327_v14 = vpop.f32.mrb[10].mxu0  ;;  %v435_v15 = vpop.f32.mrb[10].mxu1 }
 0x102   : > { %v2371_v16 = vpop.f32.mrb[11].mxu0  ;;  %v436_v17 = vadd.f32 %v435_v15, %v311_v60  ;;  %v2387_v18 = vpop.f32.mrb[11].mxu1 }
 0x107   : > { %v571_v19 = vpop.f32.mrb[12].mxu0  ;;  %v440_v20 = vpop.f32.mrb[12].mxu1 }
 0x108   : > { %v609_v21 = vadd.f32 %v571_v19, %v433_v12  ;;  %v2410_v22 = vpop.f32.mrb[13].mxu0  ;;  %v441_v23 = vadd.f32 %v440_v20, %v316_v2  ;;  %v2390_v24 = vpop.f32.mrb[13].mxu1 }
 0x109   : > { %v574_v25 = vpop.f32.mrb[14].mxu0  ;;  %v443_v26 = vpop.f32.mrb[14].mxu1 }
 0x10a   : > { %v610_v27 = vadd.f32 %v574_v25, %v436_v17  ;;  %v2411_v28 = vpop.f32.mrb[15].mxu0  ;;  %v444_v29 = vadd.f32 %v443_v26, %v319_v5  ;;  %v2391_v30 = vpop.f32.mrb[15].mxu1 }
 0x10f   : > { %v579_v31 = vpop.f32.mrb[16].mxu0  ;;  %v448_v32 = vpop.f32.mrb[16].mxu1 }
 0x110   : > { %v611_v33 = vadd.f32 %v579_v31, %v441_v23  ;;  %v2414_v34 = vpop.f32.mrb[17].mxu0  ;;  %v449_v35 = vadd.f32 %v448_v32, %v324_v1  ;;  %v2394_v36 = vpop.f32.mrb[17].mxu1 }
 0x111   : > { %v582_v37 = vpop.f32.mrb[18].mxu0  ;;  %v451_v38 = vpop.f32.mrb[18].mxu1 }
 0x112   : > { %v612_v39 = vadd.f32 %v582_v37, %v444_v29  ;;  %v2415_v40 = vpop.f32.mrb[19].mxu0  ;;  %v452_v41 = vadd.f32 %v451_v38, %v327_v14  ;;  %v2395_v42 = vpop.f32.mrb[19].mxu1 }
 0x117   : > { %v587_v43 = vpop.f32.mrb[20].mxu0  ;;  %v456_v44 = vpop.f32.mrb[20].mxu1 }
 0x118   : > { %v613_v45 = vadd.f32 %v587_v43, %v449_v35  ;;  %v2418_v46 = vpop.f32.mrb[21].mxu0  ;;  %v457_v47 = vadd.f32 %v456_v44, %v332_v59  ;;  %v2398_v48 = vpop.f32.mrb[21].mxu1 }
 0x119   : > { %v590_v49 = vpop.f32.mrb[22].mxu0  ;;  %v459_v50 = vpop.f32.mrb[22].mxu1 }
 0x11a   : > { %v614_v51 = vadd.f32 %v590_v49, %v452_v41  ;;  %v2419_v52 = vpop.f32.mrb[23].mxu0  ;;  %v460_v53 = vadd.f32 %v459_v50, %v335_v63  ;;  %v2399_v54 = vpop.f32.mrb[23].mxu1 }
 0x11f   : > { %v595_v55 = vpop.f32.mrb[24].mxu0  ;;  %v464_v56 = vpop.f32.mrb[24].mxu1 }
 0x120   : > { %v615_v57 = vadd.f32 %v595_v55, %v457_v47  ;;  %v2422_v58 = vpop.f32.mrb[25].mxu0  ;;  %v465_v60 = vadd.f32 %v464_v56, %v340_v4  ;;  %v2402_v62 = vpop.f32.mrb[25].mxu1 }
 0x121   : > { %v598_v61 = vpop.f32.mrb[26].mxu0  ;;  %v467_v3 = vpop.f32.mrb[26].mxu1 }
 0x122   : > { %v616_v0 = vadd.f32 %v598_v61, %v460_v53  ;;  %v2423_v2 = vpop.f32.mrb[27].mxu0  ;;  %v2403_v5 = vpop.f32.mrb[27].mxu1 }
 0x127   : > { %v603_v6 = vpop.f32.mrb[28].mxu0  ;;  %v719_v7 = vpop.f32.mrb[28].mxu1 }
 0x128   : > { %v617_v59 = vadd.f32 %v603_v6, %v465_v60  ;;  %v2426_v8 = vpop.f32.mrb[29].mxu0  ;;  %v757_v9 = vadd.f32 %v719_v7, %v609_v21  ;;  %v2434_v1 = vpop.f32.mrb[29].mxu1 }
 0x129   : > { %v606_v10 = vpop.f32.mrb[30].mxu0  ;;  %v722_v63 = vpop.f32.mrb[30].mxu1 }
 0x12a   : > { %v2427_v11 = vpop.f32.mrb[31].mxu0  ;;  %v758_v12 = vadd.f32 %v722_v63, %v610_v27  ;;  %v2435_v13 = vpop.f32.mrb[31].mxu1  ;;  %v3020_v10 = vld [vmem:[%s3369_s2] ss:$0 sm:$0xff] }
 0x12f   : > { %v867_v14 = vpop.f32.mrb[32].mxu0  ;;  %v727_v15 = vpop.f32.mrb[32].mxu1 }
 0x130   : > { %v905_v4 = vadd.f32 %v867_v14, %v757_v9  ;;  %v2458_v16 = vpop.f32.mrb[33].mxu0  ;;  %v759_v17 = vadd.f32 %v727_v15, %v611_v33  ;;  %v2438_v18 = vpop.f32.mrb[33].mxu1 }
 0x131   : > { %v870_v19 = vpop.f32.mrb[34].mxu0  ;;  %v730_v20 = vpop.f32.mrb[34].mxu1 }
 0x132   : > { %v906_v22 = vadd.f32 %v870_v19, %v758_v12  ;;  %v2459_v23 = vpop.f32.mrb[35].mxu0  ;;  %v760_v24 = vadd.f32 %v730_v20, %v612_v39  ;;  %v2439_v25 = vpop.f32.mrb[35].mxu1 }
 0x137   : > { %v875_v26 = vpop.f32.mrb[36].mxu0  ;;  %v735_v21 = vpop.f32.mrb[36].mxu1 }
 0x138   : > { %v907_v28 = vadd.f32 %v875_v26, %v759_v17  ;;  %v2462_v29 = vpop.f32.mrb[37].mxu0  ;;  %v761_v30 = vadd.f32 %v735_v21, %v613_v45  ;;  %v2442_v31 = vpop.f32.mrb[37].mxu1  ;;  %v2720_v26 = vmov 1983009808  }
 0x139   : > { %v878_v27 = vpop.f32.mrb[38].mxu0  ;;  %v738_v32 = vpop.f32.mrb[38].mxu1  ;;  %v1271_v21 = vunpack.c.l.s4 %v2720_v26  ;;  %v1273_v29 = vlaneseq }
 0x13a   : > { %v908_v34 = vadd.f32 %v878_v27, %v760_v24  ;;  %v2463_v35 = vpop.f32.mrb[39].mxu0  ;;  %v762_v36 = vadd.f32 %v738_v32, %v614_v51  ;;  %v2443_v37 = vpop.f32.mrb[39].mxu1 }
 0x13f   : > { %v883_v33 = vpop.f32.mrb[40].mxu0  ;;  %v743_v38 = vpop.f32.mrb[40].mxu1 }
 0x140   : > { %v909_v40 = vadd.f32 %v883_v33, %v761_v30  ;;  %v2466_v41 = vpop.f32.mrb[41].mxu0  ;;  %v763_v42 = vadd.f32 %v743_v38, %v615_v57  ;;  %v2446_v43 = vpop.f32.mrb[41].mxu1  ;;  %v1274_v38 = vshrl.u32 %v1273_v29, 7 }
 0x141   : > { %v886_v39 = vpop.f32.mrb[42].mxu0  ;;  %v746_v44 = vpop.f32.mrb[42].mxu1 }
 0x142   : > { %v910_v46 = vadd.f32 %v886_v39, %v762_v36  ;;  %v2467_v47 = vpop.f32.mrb[43].mxu0  ;;  %v764_v48 = vadd.f32 %v746_v44, %v616_v0  ;;  %v2447_v49 = vpop.f32.mrb[43].mxu1 }
 0x147   : > { %v891_v45 = vpop.f32.mrb[44].mxu0  ;;  %v751_v50 = vpop.f32.mrb[44].mxu1 }
 0x148   : > { %v3011_v52 = vadd.f32 %v891_v45, %v763_v42  ;;  %v2470_v53 = vpop.f32.mrb[45].mxu0  ;;  %v765_v54 = vadd.f32 %v751_v50, %v617_v59  ;;  %v2450_v55 = vpop.f32.mrb[45].mxu1 }
 0x149   : > { %v894_v51 = vpop.f32.mrb[46].mxu0  ;;  %v754_v60 = vpop.f32.mrb[46].mxu1 }
 0x14a   : > { %v3013_v56 = vadd.f32 %v894_v51, %v764_v48  ;;  %v2471_v58 = vpop.f32.mrb[47].mxu0  ;;  %v2451_v57 = vpop.f32.mrb[47].mxu1 }
 0x14f   : > { %v899_v61 = vpop.f32.mrb[48].mxu0  ;;  %v1015_v2 = vpop.f32.mrb[48].mxu1 }
 0x150   : > { %v3015_v62 = vadd.f32 %v899_v61, %v765_v54  ;;  %v2474_v3 = vpop.f32.mrb[49].mxu0  ;;  %v1053_v0 = vadd.f32 %v1015_v2, %v905_v4  ;;  %v2482_v5 = vpop.f32.mrb[49].mxu1 }
 0x151   : > { %v902_v6 = vpop.f32.mrb[50].mxu0  ;;  %v1018_v7 = vpop.f32.mrb[50].mxu1 }
 0x152   : > { %v2475_v8 = vpop.f32.mrb[51].mxu0  ;;  %v1054_v9 = vadd.f32 %v1018_v7, %v906_v22  ;;  %v2483_v1 = vpop.f32.mrb[51].mxu1 }
 0x157   : > { %v1163_v59 = vpop.f32.mrb[52].mxu0  ;;  %v1023_v63 = vpop.f32.mrb[52].mxu1 }
 0x158   : > { %v1201_v11 = vadd.f32 %v1163_v59, %v1053_v0  ;;  %v2506_v12 = vpop.f32.mrb[53].mxu0  ;;  %v1055_v13 = vadd.f32 %v1023_v63, %v907_v28  ;;  %v2486_v14 = vpop.f32.mrb[53].mxu1 }
 0x159   : > { %v1166_v15 = vpop.f32.mrb[54].mxu0  ;;  %v1026_v16 = vpop.f32.mrb[54].mxu1 }
 0x15a   : > { %v1217_v4 = vadd.f32 %v3020_v10, %v1201_v11  ;;  %v1202_v17 = vadd.f32 %v1166_v15, %v1054_v9  ;;  %v2507_v18 = vpop.f32.mrb[55].mxu0  ;;  %v1056_v19 = vadd.f32 %v1026_v16, %v908_v34  ;;  %v2487_v20 = vpop.f32.mrb[55].mxu1  ;;  %v1272_v34 = vunpack.c.0.s8 %v1271_v21 }
 0x15c   : > { %v1226_v22 = vmax.f32 %v1217_v4, 0.0  ;;  %v1218_v23 = vadd.f32 %v3020_v10, %v1202_v17  ;;  %v3026_v45 = vsub.s32 %v1272_v34, %v1274_v38 }
 0x15e   : > { %v1239_v24 = vmul.f32 0.0, %v1226_v22  ;;  %v1227_v25 = vmax.f32 %v1218_v23, 0.0 }
 0x15f   : > { %v1171_v30 = vpop.f32.mrb[56].mxu0  ;;  %v1031_v28 = vpop.f32.mrb[56].mxu1 }
 0x160   : > { %v1240_v31 = vmax.f32 %v1239_v24, %v1227_v25  ;;  %v1203_v27 = vadd.f32 %v1171_v30, %v1055_v13  ;;  %v2510_v32 = vpop.f32.mrb[57].mxu0  ;;  %v1057_v35 = vadd.f32 %v1031_v28, %v909_v40  ;;  %v2490_v36 = vpop.f32.mrb[57].mxu1 }
 0x161   : > { %v1174_v37 = vpop.f32.mrb[58].mxu0  ;;  %v1034_v41 = vpop.f32.mrb[58].mxu1 }
 0x162   : > { %v1219_v33 = vadd.f32 %v3020_v10, %v1203_v27  ;;  %v1204_v42 = vadd.f32 %v1174_v37, %v1056_v19  ;;  %v2511_v43 = vpop.f32.mrb[59].mxu0  ;;  %v1058_v39 = vadd.f32 %v1034_v41, %v910_v46  ;;  %v2491_v44 = vpop.f32.mrb[59].mxu1 }
 0x164   : > { %v1228_v47 = vmax.f32 %v1219_v33, 0.0  ;;  %v1220_v48 = vadd.f32 %v3020_v10, %v1204_v42 }
 0x166   : > { %v1241_v49 = vmax.f32 %v1240_v31, %v1228_v47  ;;  %v1229_v50 = vmax.f32 %v1220_v48, 0.0 }
 0x167   : > { %v1179_v40 = vpop.f32.mrb[60].mxu0  ;;  %v1039_v51 = vpop.f32.mrb[60].mxu1 }
 0x168   : > { %v1252_v53 = vrot.slane %v1241_v49, 7  ;;  %v1242_v46 = vmax.f32 %v1228_v47, %v1229_v50  ;;  %v1205_v55 = vadd.f32 %v1179_v40, %v1057_v35  ;;  %v2514_v58 = vpop.f32.mrb[61].mxu0  ;;  %v3035_v60 = vadd.f32 %v1039_v51, %v3011_v52  ;;  %v2494_v57 = vpop.f32.mrb[61].mxu1 }
 0x169   : > { %v1182_v61 = vpop.f32.mrb[62].mxu0  ;;  %v1042_v5 = vpop.f32.mrb[62].mxu1 }
 0x16a   : > { %v1261_v2 = vsel %vm1260_vm4, 0.0, %v1252_v53  ;;  %v1472_v3 = vrot.slane %v1252_v53, %v3026_v45  ;;  %v3040_v0 = vadd.f32 %v3020_v10, %v1205_v55  ;;  %v1206_v6 = vadd.f32 %v1182_v61, %v1058_v39  ;;  %v2515_v7 = vpop.f32.mrb[63].mxu0  ;;  %v2495_v1 = vpop.f32.mrb[63].mxu1 }
 0x16b   : > { %v1269_v8 = vcombine.high %v1261_v2, %v1261_v2  ;;  %v1276_v9 = vrot.slane %v1261_v2, %v3026_v45  ;;  %v3047_v52 = vadd.f32 %v1042_v5, %v3013_v56 }
 0x16c   : > { %v1230_v59 = vmax.f32 %v3040_v0, 0.0  ;;  %v1511_v13 = vrot.slane %v1472_v3, 7  ;;  %v3061_v56 = vadd.f32 %v3020_v10, %v1206_v6 }
 0x16d   : > { %v1283_v63 = vrot.slane %v1269_v8, %v3026_v45  ;;  %v1284_v11 = vcombine.high %v1276_v9, %v1276_v9  ;;  %v1354_v12 = vsel %vm1353_vm7, %v1276_v9, -inf  ;;  %v2293_v4 = vrot.slane %v1276_v9, 9 }
 0x16e   : > { %v1355_v14 = vrot.slane %v1354_v12, 4  ;;  %v3058_v16 = vmax.f32 %v1242_v46, %v1230_v59  ;;  %v1231_v1 = vmax.f32 %v3061_v56, 0.0 }
 0x16f   : > { %v1285_v17 = vcombine.high %v1283_v63, %v1283_v63  ;;  %v1361_v18 = vsel %vm1353_vm7, %v1284_v11, -inf  ;;  %v1368_v19 = vsel %vm1353_vm7, %v1283_v63, -inf  ;;  %v1502_v20 = vrot.slane %v1284_v11, 7  ;;  %v3065_v22 = vpop.f32.mrb[64].mxu0  ;;  %v3067_v21 = vpop.f32.mrb[64].mxu1 }
 0x170   : > { %v1356_v23 = vmax.f32 %v1354_v12, %v1355_v14  ;;  %v1362_v24 = vrot.slane %v1361_v18, 4  ;;  %v1369_v25 = vrot.slane %v1368_v19, 4  ;;  %v1505_v26 = vrot.slane %v1283_v63, 7  ;;  %v2518_v29 = vpop.f32.mrb[65].mxu0  ;;  %v2498_v35 = vpop.f32.mrb[65].mxu1 }
 0x171   : > { %v1375_v30 = vsel %vm1353_vm7, %v1285_v17, -inf  ;;  %v1503_v31 = vsel %vm3052_vm10, %v2293_v4, %v1502_v20  ;;  %v1504_v28 = vrot.slane %v1502_v20, 2  ;;  %v1508_v27 = vrot.slane %v1285_v17, 7  ;;  %v3072_v32 = vpop.f32.mrb[66].mxu0  ;;  %v1050_v41 = vpop.f32.mrb[66].mxu1 }
 0x172   : > { %v1357_v36 = vrot.slane %v1356_v23, 2  ;;  %v1363_v37 = vmax.f32 %v1361_v18, %v1362_v24  ;;  %v1370_v33 = vmax.f32 %v1368_v19, %v1369_v25  ;;  %v1376_v34 = vrot.slane %v1375_v30, 4  ;;  %v2519_v38 = vpop.f32.mrb[67].mxu0  ;;  %v2499_v47 = vpop.f32.mrb[67].mxu1 }
 0x173   : > { %v1506_v42 = vsel %vm3052_vm10, %v1504_v28, %v1505_v26  ;;  %v1507_v43 = vrot.slane %v1505_v26, 2  ;;  %v1510_v39 = vrot.slane %v1508_v27, 2  ;;  %v1568_v44 = vsel %vm1353_vm7, %v1503_v31, -inf }
 0x174   : > { %v1358_v48 = vmax.f32 %v1356_v23, %v1357_v36  ;;  %v1364_v49 = vrot.slane %v1363_v37, 2  ;;  %v1371_v50 = vrot.slane %v1370_v33, 2  ;;  %v1377_v40 = vmax.f32 %v1375_v30, %v1376_v34 }
 0x175   : > { %v1509_v53 = vsel %vm3052_vm10, %v1507_v43, %v1508_v27  ;;  %v1512_v54 = vsel %vm3052_vm10, %v1510_v39, %v1511_v13  ;;  %v1569_v46 = vrot.slane %v1568_v44, 4  ;;  %v1575_v51 = vsel %vm1353_vm7, %v1506_v42, -inf }
 0x176   : > { %v1359_v55 = vrot.slane %v1358_v48, 1  ;;  %v1365_v58 = vmax.f32 %v1363_v37, %v1364_v49  ;;  %v1372_v57 = vmax.f32 %v1370_v33, %v1371_v50  ;;  %v1378_v61 = vrot.slane %v1377_v40, 2 }
 0x177   : > { %v1570_v2 = vmax.f32 %v1568_v44, %v1569_v46  ;;  %v1576_v3 = vrot.slane %v1575_v51, 4  ;;  %v1582_v5 = vsel %vm1353_vm7, %v1509_v53, -inf  ;;  %v1589_v6 = vsel %vm1353_vm7, %v1512_v54, -inf  ;;  %v3084_v7 = vpop.f32.mrb[68].mxu0 }
 0x178   : > { %v1366_v8 = vrot.slane %v1365_v58, 1  ;;  %v1379_v9 = vmax.f32 %v1377_v40, %v1378_v61  ;;  %v2522_v63 = vpop.f32.mrb[69].mxu0  ;;  %v1583_v13 = vrot.slane %v1582_v5, 4  ;;  %v1590_v14 = vrot.slane %v1589_v6, 4 }
 0x179   : > { %v1571_v11 = vrot.slane %v1570_v2, 2  ;;  %v1577_v12 = vmax.f32 %v1575_v51, %v1576_v3  ;;  %v1198_v4 = vpop.f32.mrb[70].mxu0  ;;  %v1360_v17 = vmax.f32 %v1358_v48, %v1359_v55  ;;  %v1373_v18 = vrot.slane %v1372_v57, 1 }
 0x17a   : > { %v1253_v19 = vrot.slane %v3058_v16, 7  ;;  %v2523_v20 = vpop.f32.mrb[71].mxu0  ;;  %v1584_v25 = vmax.f32 %v1582_v5, %v1583_v13  ;;  %v1591_v26 = vmax.f32 %v1589_v6, %v1590_v14  ;;  %v1367_v29 = vmax.f32 %v1365_v58, %v1366_v8 }
 0x17b   : > { %v1572_v23 = vmax.f32 %v1570_v2, %v1571_v11  ;;  %v1578_v24 = vrot.slane %v1577_v12, 2  ;;  %v1380_v30 = vrot.slane %v1379_v9, 1  ;;  %v3091_v56 = vmax.f32 %v1230_v59, %v1231_v1 }
 0x17c   : > { %v1262_v31 = vsel %vm1260_vm4, 0.0, %v1253_v19  ;;  %v1585_v35 = vrot.slane %v1584_v25, 2  ;;  %v1592_v36 = vrot.slane %v1591_v26, 2  ;;  %v1374_v37 = vmax.f32 %v1372_v57, %v1373_v18 }
 0x17d   : > { %v1573_v28 = vrot.slane %v1572_v23, 1  ;;  %v1579_v27 = vmax.f32 %v1577_v12, %v1578_v24  ;;  %v1286_v33 = vcombine.high %v1262_v31, %v1262_v31  ;;  %v1293_v16 = vrot.slane %v1262_v31, %v3026_v45 }
 0x17e   : > { %v3096_v34 = vadd.f32 %v3067_v21, %v3015_v62  ;;  %v1586_v42 = vmax.f32 %v1584_v25, %v1585_v35  ;;  %v1593_v43 = vmax.f32 %v1591_v26, %v1592_v36  ;;  %v1381_v39 = vmax.f32 %v1379_v9, %v1380_v30 }
 0x17f   : > { %v1574_v38 = vmax.f32 %v1572_v23, %v1573_v28  ;;  %v1580_v41 = vrot.slane %v1579_v27, 1  ;;  %v3099_v0 = vrot.slane %v1286_v33, %v3026_v45  ;;  %v1301_v59 = vcombine.high %v1293_v16, %v1293_v16 }
 0x180   : > { %v1382_v44 = vsel %vm1353_vm7, %v1293_v16, -inf  ;;  %v1587_v48 = vrot.slane %v1586_v42, 1  ;;  %v1594_v49 = vrot.slane %v1593_v43, 1  ;;  %v1479_v4 = vrot.slane %v1253_v19, %v3026_v45 }
 0x181   : > { %v1581_v47 = vmax.f32 %v1579_v27, %v1580_v41  ;;  %v1680_v50 = vmax.f32 %v1360_v17, %v1574_v38  ;;  %v3104_v40 = vcombine.high %v3099_v0, %v3099_v0  ;;  %v1383_v62 = vrot.slane %v1382_v44, 4 }
 0x182   : > { %v1389_v21 = vsel %vm1353_vm7, %v1301_v59, -inf  ;;  %v1396_v53 = vsel %vm1353_vm7, %v3099_v0, -inf  ;;  %v1588_v54 = vmax.f32 %v1586_v42, %v1587_v48  ;;  %v1595_v46 = vmax.f32 %v1593_v43, %v1594_v49 }
 0x183   : > { %v1681_v51 = vmax.f32 %v1367_v29, %v1581_v47  ;;  %v1696_v55 = vpack.c.bf16 %v1680_v50, %v1680_v50  ;;  %v1384_v58 = vmax.f32 %v1382_v44, %v1383_v62  ;;  %v1390_v57 = vrot.slane %v1389_v21, 4 }
 0x184   : > { %v1397_v61 = vrot.slane %v1396_v53, 4  ;;  %v1403_v2 = vsel %vm1353_vm7, %v3104_v40, -inf  ;;  %v1682_v3 = vmax.f32 %v1374_v37, %v1588_v54  ;;  %v1683_v5 = vmax.f32 %v1381_v39, %v1595_v46 }
 0x185   : > { %v1697_v6 = vpack.c.bf16 %v1681_v51, %v1681_v51  ;;  %v1734_v8 = vrot.slane %v1696_v55, %v3026_v45  ;;  %v1385_v9 = vrot.slane %v1384_v58, 2  ;;  %v1391_v1 = vmax.f32 %v1389_v21, %v1390_v57 }
 0x186   : > { %v1398_v63 = vmax.f32 %v1396_v53, %v1397_v61  ;;  %v1404_v11 = vrot.slane %v1403_v2, 4  ;;  %v1698_v12 = vpack.c.bf16 %v1682_v3, %v1682_v3  ;;  %v1699_v13 = vpack.c.bf16 %v1683_v5, %v1683_v5 }
 0x187   : > { %v1741_v14 = vrot.slane %v1697_v6, %v3026_v45  ;;  %v1386_v17 = vmax.f32 %v1384_v58, %v1385_v9  ;;  %v1392_v18 = vrot.slane %v1391_v1, 2  ;;  %v1846_v26 = vrot.slane %v1734_v8, %v3026_v45 }
 0x188   : > { %v1399_v20 = vrot.slane %v1398_v63, 2  ;;  %v1405_v23 = vmax.f32 %v1403_v2, %v1404_v11  ;;  %v1748_v24 = vrot.slane %v1698_v12, %v3026_v45  ;;  %v1755_v25 = vrot.slane %v1699_v13, %v3026_v45 }
 0x189   : > { %v1853_v29 = vrot.slane %v1741_v14, %v3026_v45  ;;  %v1387_v30 = vrot.slane %v1386_v17, 1  ;;  %v1393_v31 = vmax.f32 %v1391_v1, %v1392_v18  ;;  %v2294_v36 = vrot.slane %v1293_v16, 9 }
 0x18a   : > { %v1400_v28 = vmax.f32 %v1398_v63, %v1399_v20  ;;  %v1860_v27 = vrot.slane %v1748_v24, %v3026_v45  ;;  %v1406_v35 = vrot.slane %v1405_v23, 2  ;;  %v1515_v19 = vrot.slane %v1301_v59, 7 }
 0x18b   : > { %v1867_v37 = vrot.slane %v1755_v25, %v3026_v45  ;;  %v3120_v33 = vunpack.c.l.b16 %v1846_v26  ;;  %v3122_v38 = vunpack.c.l.b16 %v1853_v29  ;;  %v1524_v42 = vrot.slane %v1479_v4, 7 }
 0x18c   : > { %v1516_v41 = vsel %vm3052_vm10, %v2294_v36, %v1515_v19  ;;  %v3126_v43 = vmax.f32 %v1386_v17, %v1387_v30  ;;  %v1394_v39 = vrot.slane %v1393_v31, 1  ;;  %v1401_v44 = vrot.slane %v1400_v28, 1 }
 0x18d   : > { %v1517_v47 = vrot.slane %v1515_v19, 2  ;;  %v3128_v48 = vunpack.c.l.b16 %v1860_v27  ;;  %v1407_v49 = vmax.f32 %v1405_v23, %v1406_v35  ;;  %v1518_v16 = vrot.slane %v3099_v0, 7 }
 0x18e   : > { %v1521_v59 = vrot.slane %v3104_v40, 7  ;;  %v3132_v50 = vunpack.c.l.b16 %v1867_v37  ;;  %v1596_v62 = vsel %vm1353_vm7, %v1516_v41, -inf  ;;  %v1207_v21 = vadd.f32 %v3065_v22, %v3035_v60 }
 0x18f   : > { %v1208_v53 = vadd.f32 %v3072_v32, %v3047_v52  ;;  %v1519_v54 = vsel %vm3052_vm10, %v1517_v47, %v1518_v16  ;;  %v1520_v46 = vrot.slane %v1518_v16, 2  ;;  %v1597_v55 = vrot.slane %v1596_v62, 4 }
 0x190   : > { %v1523_v51 = vrot.slane %v1521_v59, 2  ;;  %v1603_v0 = vsel %vm1353_vm7, %v1519_v54, -inf  ;;  %v1223_v40 = vadd.f32 %v3020_v10, %v1207_v21  ;;  %v1209_v57 = vadd.f32 %v3084_v7, %v3096_v34 }
 0x191   : > { %v1224_v58 = vadd.f32 %v3020_v10, %v1208_v53  ;;  %v1522_v60 = vsel %vm3052_vm10, %v1520_v46, %v1521_v59  ;;  %v1598_v22 = vmax.f32 %v1596_v62, %v1597_v55  ;;  %v1604_v32 = vrot.slane %v1603_v0, 4 }
 0x192   : > { %v1525_v52 = vsel %vm3052_vm10, %v1523_v51, %v1524_v42  ;;  %v1610_v61 = vsel %vm1353_vm7, %v1522_v60, -inf  ;;  %v1232_v3 = vmax.f32 %v1223_v40, 0.0  ;;  %v1968_v7 = vrot.slane %v3122_v38, 7 }
 0x193   : > { %v1617_v2 = vsel %vm1353_vm7, %v1525_v52, -inf  ;;  %v1233_v5 = vmax.f32 %v1224_v58, 0.0  ;;  %v1599_v6 = vrot.slane %v1598_v22, 2  ;;  %v1605_v8 = vmax.f32 %v1603_v0, %v1604_v32 }
 0x194   : > { %v1611_v9 = vrot.slane %v1610_v61, 4  ;;  %v1618_v1 = vrot.slane %v1617_v2, 4  ;;  %v3154_v34 = vmax.f32 %v3091_v56, %v1232_v3  ;;  %v1225_v11 = vadd.f32 %v3020_v10, %v1209_v57 }
 0x195   : > { %v1246_v63 = vmax.f32 %v1232_v3, %v1233_v5  ;;  %v1600_v12 = vmax.f32 %v1598_v22, %v1599_v6  ;;  %v1606_v13 = vrot.slane %v1605_v8, 2  ;;  %v1395_v17 = vmax.f32 %v1393_v31, %v1394_v39 }
 0x196   : > { %v1612_v14 = vmax.f32 %v1610_v61, %v1611_v9  ;;  %v1619_v4 = vmax.f32 %v1617_v2, %v1618_v1  ;;  %v1408_v18 = vrot.slane %v1407_v49, 1  ;;  %v1254_v20 = vrot.slane %v3154_v34, 7 }
 0x197   : > { %v1234_v23 = vmax.f32 %v1225_v11, 0.0  ;;  %v1601_v24 = vrot.slane %v1600_v12, 1  ;;  %v1607_v25 = vmax.f32 %v1605_v8, %v1606_v13  ;;  %v1971_v30 = vrot.slane %v3128_v48, 6 }
 0x198   : > { %v1613_v26 = vrot.slane %v1612_v14, 2  ;;  %v1620_v29 = vrot.slane %v1619_v4, 2  ;;  %v1402_v56 = vmax.f32 %v1400_v28, %v1401_v44  ;;  %v1263_v27 = vsel %vm1260_vm4, 0.0, %v1254_v20 }
 0x199   : > { %v3160_v35 = vmax.f32 %v1246_v63, %v1234_v23  ;;  %v1602_v10 = vmax.f32 %v1600_v12, %v1601_v24  ;;  %v1608_v36 = vrot.slane %v1607_v25, 1  ;;  %v1973_v31 = vrot.slane %v3132_v50, 5 }
 0x19a   : > { %v1614_v19 = vmax.f32 %v1612_v14, %v1613_v26  ;;  %v1621_v37 = vmax.f32 %v1619_v4, %v1620_v29  ;;  %v1409_v38 = vmax.f32 %v1407_v49, %v1408_v18  ;;  %v1303_v41 = vcombine.high %v1263_v27, %v1263_v27 }
 0x19b   : > { %v1310_v42 = vrot.slane %v1263_v27, %v3026_v45  ;;  %v1609_v39 = vmax.f32 %v1607_v25, %v1608_v36  ;;  %v1684_v48 = vmax.f32 %v3126_v43, %v1602_v10  ;;  %v1970_v62 = vsel %vm1969_vm11, %v1968_v7, %v3120_v33 }
 0x19c   : > { %v1615_v47 = vrot.slane %v1614_v19, 1  ;;  %v1622_v16 = vrot.slane %v1621_v37, 1  ;;  %v1317_v28 = vrot.slane %v1303_v41, %v3026_v45  ;;  %v1972_v2 = vsel %vm1494_vm3, %v1971_v30, %v1970_v62 }
 0x19d   : > { %v1318_v44 = vcombine.high %v1310_v42, %v1310_v42  ;;  %v1410_v59 = vsel %vm1353_vm7, %v1310_v42, -inf  ;;  %v1685_v49 = vmax.f32 %v1395_v17, %v1609_v39  ;;  %v1700_v53 = vpack.c.bf16 %v1684_v48, %v1684_v48 }
 0x19e   : > { %v1616_v21 = vmax.f32 %v1614_v19, %v1615_v47  ;;  %v1623_v50 = vmax.f32 %v1621_v37, %v1622_v16  ;;  %v1319_v54 = vcombine.high %v1317_v28, %v1317_v28  ;;  %v1411_v46 = vrot.slane %v1410_v59, 4 }
 0x19f   : > { %v1417_v51 = vsel %vm1353_vm7, %v1318_v44, -inf  ;;  %v1424_v55 = vsel %vm1353_vm7, %v1317_v28, -inf  ;;  %v1701_v40 = vpack.c.bf16 %v1685_v49, %v1685_v49  ;;  %v1762_v58 = vrot.slane %v1700_v53, %v3026_v45 }
 0x1a0   : > { %v1686_v43 = vmax.f32 %v1402_v56, %v1616_v21  ;;  %v1687_v0 = vmax.f32 %v1409_v38, %v1623_v50  ;;  %v1412_v57 = vmax.f32 %v1410_v59, %v1411_v46  ;;  %v1418_v60 = vrot.slane %v1417_v51, 4 }
 0x1a1   : > { %v1425_v52 = vrot.slane %v1424_v55, 4  ;;  %v1431_v33 = vsel %vm1353_vm7, %v1319_v54, -inf  ;;  %v1769_v61 = vrot.slane %v1701_v40, %v3026_v45  ;;  %v1874_v7 = vrot.slane %v1762_v58, %v3026_v45 }
 0x1a2   : > { %v1702_v22 = vpack.c.bf16 %v1686_v43, %v1686_v43  ;;  %v1703_v32 = vpack.c.bf16 %v1687_v0, %v1687_v0  ;;  %v1413_v3 = vrot.slane %v1412_v57, 2  ;;  %v1419_v5 = vmax.f32 %v1417_v51, %v1418_v60 }
 0x1a3   : > { %v1426_v6 = vmax.f32 %v1424_v55, %v1425_v52  ;;  %v1432_v8 = vrot.slane %v1431_v33, 4  ;;  %v1486_v34 = vrot.slane %v1254_v20, %v3026_v45  ;;  %v1881_v63 = vrot.slane %v1769_v61, %v3026_v45 }
 0x1a4   : > { %v1776_v9 = vrot.slane %v1702_v22, %v3026_v45  ;;  %v1783_v1 = vrot.slane %v1703_v32, %v3026_v45  ;;  %v1414_v11 = vmax.f32 %v1412_v57, %v1413_v3  ;;  %v1420_v12 = vrot.slane %v1419_v5, 2 }
 0x1a5   : > { %v1427_v13 = vrot.slane %v1426_v6, 2  ;;  %v1433_v4 = vmax.f32 %v1431_v33, %v1432_v8  ;;  %v1528_v17 = vrot.slane %v1318_v44, 7  ;;  %v2295_v25 = vrot.slane %v1310_v42, 9 }
 0x1a6   : > { %v1888_v14 = vrot.slane %v1776_v9, %v3026_v45  ;;  %v1895_v18 = vrot.slane %v1783_v1, %v3026_v45  ;;  %v1415_v23 = vrot.slane %v1414_v11, 1  ;;  %v3182_v24 = vmax.f32 %v1419_v5, %v1420_v12 }
 0x1a7   : > { %v1537_v26 = vrot.slane %v1486_v34, 7  ;;  %v1255_v29 = vrot.slane %v3160_v35, 7  ;;  %v3186_v20 = vsel %vm1974_vm12, %v1973_v31, %v1972_v2  ;;  %v3188_v30 = vunpack.c.l.b16 %v1874_v7 }
 0x1a8   : > { %v3190_v56 = vunpack.c.l.b16 %v1881_v63  ;;  %v1428_v27 = vmax.f32 %v1426_v6, %v1427_v13  ;;  %v1529_v10 = vsel %vm3052_vm10, %v2295_v25, %v1528_v17  ;;  %v3194_v36 = vunpack.c.l.b16 %v1888_v14 }
 0x1a9   : > { %v1434_v19 = vrot.slane %v1433_v4, 2  ;;  %v1530_v37 = vrot.slane %v1528_v17, 2  ;;  %v1531_v38 = vrot.slane %v1317_v28, 7  ;;  %v3196_v41 = vunpack.c.l.b16 %v1895_v18 }
 0x1aa   : > { %v1416_v42 = vmax.f32 %v1414_v11, %v1415_v23  ;;  %v1422_v39 = vrot.slane %v3182_v24, 1  ;;  %v1534_v31 = vrot.slane %v1319_v54, 7  ;;  %v1624_v48 = vsel %vm1353_vm7, %v1529_v10, -inf }
 0x1ab   : > { %v1532_v47 = vsel %vm3052_vm10, %v1530_v37, %v1531_v38  ;;  %v1533_v16 = vrot.slane %v1531_v38, 2  ;;  %v1264_v44 = vsel %vm1260_vm4, 0.0, %v1255_v29  ;;  %v1429_v59 = vrot.slane %v1428_v27, 1 }
 0x1ac   : > { %v1536_v62 = vrot.slane %v1534_v31, 2  ;;  %v1625_v21 = vrot.slane %v1624_v48, 4  ;;  %v1631_v28 = vsel %vm1353_vm7, %v1532_v47, -inf  ;;  %v1320_v53 = vcombine.high %v1264_v44, %v1264_v44 }
 0x1ad   : > { %v1535_v50 = vsel %vm3052_vm10, %v1533_v16, %v1534_v31  ;;  %v1632_v49 = vrot.slane %v1631_v28, 4  ;;  %v3209_v54 = vrot.slane %v1264_v44, %v3026_v45  ;;  %v1435_v46 = vmax.f32 %v1433_v4, %v1434_v19 }
 0x1ae   : > { %v1538_v51 = vsel %vm3052_vm10, %v1536_v62, %v1537_v26  ;;  %v1626_v55 = vmax.f32 %v1624_v48, %v1625_v21  ;;  %v1638_v43 = vsel %vm1353_vm7, %v1535_v50, -inf  ;;  %v3216_v57 = vrot.slane %v1320_v53, %v3026_v45 }
 0x1af   : > { %v1633_v0 = vmax.f32 %v1631_v28, %v1632_v49  ;;  %v1639_v40 = vrot.slane %v1638_v43, 4  ;;  %v1645_v58 = vsel %vm1353_vm7, %v1538_v51, -inf  ;;  %v3220_v33 = vcombine.high %v3209_v54, %v3209_v54 }
 0x1b0   : > { %v1627_v60 = vrot.slane %v1626_v55, 2  ;;  %v1646_v52 = vrot.slane %v1645_v58, 4  ;;  %v1438_v22 = vsel %vm1353_vm7, %v3209_v54, -inf  ;;  %v3226_v2 = vcombine.high %v3216_v57, %v3216_v57 }
 0x1b1   : > { %v1634_v32 = vrot.slane %v1633_v0, 2  ;;  %v1640_v61 = vmax.f32 %v1638_v43, %v1639_v40  ;;  %v1439_v3 = vrot.slane %v1438_v22, 4  ;;  %v1445_v8 = vsel %vm1353_vm7, %v3220_v33, -inf }
 0x1b2   : > { %v1628_v5 = vmax.f32 %v1626_v55, %v1627_v60  ;;  %v1647_v6 = vmax.f32 %v1645_v58, %v1646_v52  ;;  %v1452_v9 = vsel %vm1353_vm7, %v3216_v57, -inf  ;;  %v1446_v63 = vrot.slane %v1445_v8, 4 }
 0x1b3   : > { %v1635_v1 = vmax.f32 %v1633_v0, %v1634_v32  ;;  %v1641_v7 = vrot.slane %v1640_v61, 2  ;;  %v1440_v34 = vmax.f32 %v1438_v22, %v1439_v3  ;;  %v1453_v13 = vrot.slane %v1452_v9, 4 }
 0x1b4   : > { %v1629_v11 = vrot.slane %v1628_v5, 1  ;;  %v1648_v12 = vrot.slane %v1647_v6, 2  ;;  %v1459_v14 = vsel %vm1353_vm7, %v3226_v2, -inf  ;;  %v1447_v23 = vmax.f32 %v1445_v8, %v1446_v63 }
 0x1b5   : > { %v1636_v4 = vrot.slane %v1635_v1, 1  ;;  %v1642_v17 = vmax.f32 %v1640_v61, %v1641_v7  ;;  %v1441_v18 = vrot.slane %v1440_v34, 2  ;;  %v1436_v25 = vrot.slane %v1435_v46, 1 }
 0x1b6   : > { %v1630_v26 = vmax.f32 %v1628_v5, %v1629_v11  ;;  %v1649_v10 = vmax.f32 %v1647_v6, %v1648_v12  ;;  %v1454_v19 = vmax.f32 %v1452_v9, %v1453_v13  ;;  %v1976_v37 = vrot.slane %v3190_v56, 7 }
 0x1b7   : > { %v1423_v38 = vmax.f32 %v3182_v24, %v1422_v39  ;;  %v1637_v31 = vmax.f32 %v1635_v1, %v1636_v4  ;;  %v1643_v47 = vrot.slane %v1642_v17, 1  ;;  %v1430_v16 = vmax.f32 %v1428_v27, %v1429_v59 }
 0x1b8   : > { %v1650_v48 = vrot.slane %v1649_v10, 1  ;;  %v1688_v44 = vmax.f32 %v1416_v42, %v1630_v26  ;;  %v1460_v62 = vrot.slane %v1459_v14, 4  ;;  %v3236_v50 = vmax.f32 %v1440_v34, %v1441_v18 }
 0x1b9   : > { %v1644_v21 = vmax.f32 %v1642_v17, %v1643_v47  ;;  %v1689_v28 = vmax.f32 %v1423_v38, %v1637_v31  ;;  %v1448_v49 = vrot.slane %v1447_v23, 2  ;;  %v1437_v53 = vmax.f32 %v1435_v46, %v1436_v25 }
 0x1ba   : > { %v1651_v51 = vmax.f32 %v1649_v10, %v1650_v48  ;;  %v1704_v55 = vpack.c.bf16 %v1688_v44, %v1688_v44  ;;  %v1455_v43 = vrot.slane %v1454_v19, 2  ;;  %v1978_v0 = vrot.slane %v3194_v36, 6 }
 0x1bb   : > { %v1980_v40 = vrot.slane %v3196_v41, 5  ;;  %v1690_v24 = vmax.f32 %v1430_v16, %v1644_v21  ;;  %v1705_v39 = vpack.c.bf16 %v1689_v28, %v1689_v28  ;;  %v1461_v42 = vmax.f32 %v1459_v14, %v1460_v62 }
 0x1bc   : > { %v1691_v58 = vmax.f32 %v1437_v53, %v1651_v51  ;;  %v1790_v27 = vrot.slane %v1704_v55, %v3026_v45  ;;  %v1493_v59 = vrot.slane %v1255_v29, %v3026_v45  ;;  %v1443_v52 = vrot.slane %v3236_v50, 1 }
 0x1bd   : > { %v1706_v60 = vpack.c.bf16 %v1690_v24, %v1690_v24  ;;  %v1797_v46 = vrot.slane %v1705_v39, %v3026_v45  ;;  %v3246_v22 = vmax.f32 %v1447_v23, %v1448_v49  ;;  %v3249_v32 = vmax.f32 %v1454_v19, %v1455_v43 }
 0x1be   : > { %v1707_v36 = vpack.c.bf16 %v1691_v58, %v1691_v58  ;;  %v1902_v41 = vrot.slane %v1790_v27, %v3026_v45  ;;  %v2296_v61 = vrot.slane %v3209_v54, 9  ;;  %v1541_v29 = vrot.slane %v3220_v33, 7 }
 0x1bf   : > { %v1804_v3 = vrot.slane %v1706_v60, %v3026_v45  ;;  %v1909_v35 = vrot.slane %v1797_v46, %v3026_v45  ;;  %v1544_v5 = vrot.slane %v3216_v57, 7  ;;  %v1462_v9 = vrot.slane %v1461_v42, 2 }
 0x1c0   : > { %v1811_v6 = vrot.slane %v1707_v36, %v3026_v45  ;;  %v1960_v8 = vunpack.c.l.b16 %v1902_v41  ;;  %v1547_v1 = vrot.slane %v3226_v2, 7  ;;  %v1542_v54 = vsel %vm3052_vm10, %v2296_v61, %v1541_v29 }
 0x1c1   : > { %v1916_v7 = vrot.slane %v1804_v3, %v3026_v45  ;;  %v1961_v34 = vunpack.c.l.b16 %v1909_v35  ;;  %v1543_v63 = vrot.slane %v1541_v29, 2  ;;  %v1546_v33 = vrot.slane %v1544_v5, 2 }
 0x1c2   : > { %v1923_v11 = vrot.slane %v1811_v6, %v3026_v45  ;;  %v1549_v12 = vrot.slane %v1547_v1, 2  ;;  %v1550_v57 = vrot.slane %v1493_v59, 7  ;;  %v1652_v2 = vsel %vm1353_vm7, %v1542_v54, -inf }
 0x1c3   : > { %v1962_v13 = vunpack.c.l.b16 %v1916_v7  ;;  %v1982_v14 = vrot.slane %v1961_v34, 7  ;;  %v1545_v4 = vsel %vm3052_vm10, %v1543_v63, %v1544_v5  ;;  %v1548_v18 = vsel %vm3052_vm10, %v1546_v33, %v1547_v1 }
 0x1c4   : > { %v1963_v17 = vunpack.c.l.b16 %v1923_v11  ;;  %v1551_v23 = vsel %vm3052_vm10, %v1549_v12, %v1550_v57  ;;  %v1653_v25 = vrot.slane %v1652_v2, 4  ;;  %v1659_v10 = vsel %vm1353_vm7, %v1545_v4, -inf }
 0x1c5   : > { %v1984_v26 = vrot.slane %v1962_v13, 6  ;;  %v1666_v19 = vsel %vm1353_vm7, %v1548_v18, -inf  ;;  %v1673_v38 = vsel %vm1353_vm7, %v1551_v23, -inf  ;;  %v1660_v16 = vrot.slane %v1659_v10, 4 }
 0x1c6   : > { %v1986_v31 = vrot.slane %v1963_v17, 5  ;;  %v1654_v47 = vmax.f32 %v1652_v2, %v1653_v25  ;;  %v1667_v48 = vrot.slane %v1666_v19, 4  ;;  %v1674_v44 = vrot.slane %v1673_v38, 4 }
 0x1c7   : > { %v1977_v62 = vsel %vm1969_vm11, %v1976_v37, %v3188_v30  ;;  %v1983_v15 = vsel %vm1969_vm11, %v1982_v14, %v1960_v8  ;;  %v1994_v21 = vpack.c.b16 %v3186_v20, %v3186_v20  ;;  %v1661_v49 = vmax.f32 %v1659_v10, %v1660_v16 }
 0x1c8   : > { %v1655_v28 = vrot.slane %v1654_v47, 2  ;;  %v1668_v53 = vmax.f32 %v1666_v19, %v1667_v48  ;;  %v1979_v51 = vsel %vm1494_vm3, %v1978_v0, %v1977_v62  ;;  %v1463_v55 = vmax.f32 %v1461_v42, %v1462_v9 }
 0x1c9   : > { %v1675_v43 = vmax.f32 %v1673_v38, %v1674_v44  ;;  %v1981_v24 = vsel %vm1974_vm12, %v1980_v40, %v1979_v51  ;;  %v1985_v39 = vsel %vm1494_vm3, %v1984_v26, %v1983_v15  ;;  %2297 = vst.sshfl [vmem:[%s3285_s29] sm:$0x3 pattern:$0x76325410] %v1994_v21  ;;  %v1662_v56 = vrot.slane %v1661_v49, 2 }
 0x1ca   : > { %v1656_v30 = vmax.f32 %v1654_v47, %v1655_v28  ;;  %v1669_v20 = vrot.slane %v1668_v53, 2  ;;  %v1987_v37 = vsel %vm1974_vm12, %v1986_v31, %v1985_v39  ;;  %v1450_v58 = vrot.slane %v3246_v22, 1 }
 0x1cb   : > { %v1676_v0 = vrot.slane %v1675_v43, 2  ;;  %v1995_v27 = vpack.c.b16 %v1981_v24, %v1981_v24  ;;  %v1996_v42 = vpack.c.b16 %v1987_v37, %v1987_v37  ;;  %v1457_v40 = vrot.slane %v3249_v32, 1 }
 0x1cc   : > { %v1657_v59 = vrot.slane %v1656_v30, 1  ;;  %v1663_v60 = vmax.f32 %v1661_v49, %v1662_v56  ;;  %v1670_v46 = vmax.f32 %v1668_v53, %v1669_v20  ;;  %v1464_v36 = vrot.slane %v1463_v55, 1 }
 0x1cd   : > { %v1677_v41 = vmax.f32 %v1675_v43, %v1676_v0  ;;  %2298 = vst.sshfl [vmem:[%s3285_s29 + $0x2] sm:$0x3 pattern:$0x76325410] %v1995_v27  ;;  %v1444_v61 = vmax.f32 %v3236_v50, %v1443_v52  ;;  %v1451_v5 = vmax.f32 %v3246_v22, %v1450_v58  ;;  %v1458_v8 = vmax.f32 %v3249_v32, %v1457_v40 }
 0x1ce   : > { %2299 = vst.sshfl [vmem:[%s3285_s29 + $0x4] sm:$0x3 pattern:$0x76325410] %v1996_v42  ;;  %v1658_v3 = vmax.f32 %v1656_v30, %v1657_v59  ;;  %v1664_v35 = vrot.slane %v1663_v60, 1  ;;  %v1671_v29 = vrot.slane %v1670_v46, 1  ;;  %v1465_v34 = vmax.f32 %v1463_v55, %v1464_v36 }
 0x1cf   : > { %v1678_v6 = vrot.slane %v1677_v41, 1 }
 0x1d0   : > { %v1665_v9 = vmax.f32 %v1663_v60, %v1664_v35  ;;  %v1672_v1 = vmax.f32 %v1670_v46, %v1671_v29  ;;  %v1692_v7 = vmax.f32 %v1444_v61, %v1658_v3 }
 0x1d1   : > { %v1679_v54 = vmax.f32 %v1677_v41, %v1678_v6 }
 0x1d2   : > { %v1693_v63 = vmax.f32 %v1451_v5, %v1665_v9  ;;  %v1694_v11 = vmax.f32 %v1458_v8, %v1672_v1  ;;  %v1708_v33 = vpack.c.bf16 %v1692_v7, %v1692_v7 }
 0x1d3   : > { %v1695_v12 = vmax.f32 %v1465_v34, %v1679_v54 }
 0x1d4   : > { %v1709_v57 = vpack.c.bf16 %v1693_v63, %v1693_v63  ;;  %v1710_v13 = vpack.c.bf16 %v1694_v11, %v1694_v11  ;;  %v1818_v50 = vrot.slane %v1708_v33, %v3026_v45 }
 0x1d5   : > { %v1711_v52 = vpack.c.bf16 %v1695_v12, %v1695_v12 }
 0x1d6   : > { %v1825_v22 = vrot.slane %v1709_v57, %v3026_v45  ;;  %v1832_v32 = vrot.slane %v1710_v13, %v3026_v45  ;;  %v1930_v4 = vrot.slane %v1818_v50, %v3026_v45 }
 0x1d7   : > { %v1839_v14 = vrot.slane %v1711_v52, %v3026_v45 }
 0x1d8   : > { %v1937_v2 = vrot.slane %v1825_v22, %v3026_v45  ;;  %v1944_v17 = vrot.slane %v1832_v32, %v3026_v45  ;;  %v1964_v10 = vunpack.c.l.b16 %v1930_v4 }
 0x1d9   : > { %v1951_v18 = vrot.slane %v1839_v14, %v3026_v45 }
 0x1da   : > { %v1965_v23 = vunpack.c.l.b16 %v1937_v2  ;;  %v1966_v25 = vunpack.c.l.b16 %v1944_v17 }
 0x1db   : > { %v1967_v26 = vunpack.c.l.b16 %v1951_v18 }
 0x1dc   : > { %v1988_v19 = vrot.slane %v1965_v23, 7  ;;  %v1990_v38 = vrot.slane %v1966_v25, 6 }
 0x1dd   : > { %v1992_v31 = vrot.slane %v1967_v26, 5 }
 0x1de   : > { %v1989_v47 = vsel %vm1969_vm11, %v1988_v19, %v1964_v10 }
 0x1df   : > { %v1991_v16 = vsel %vm1494_vm3, %v1990_v38, %v1989_v47 }
 0x1e0   : > { %v1993_v48 = vsel %vm1974_vm12, %v1992_v31, %v1991_v16 }
 0x1e1   : > { %v1997_v45 = vpack.c.b16 %v1993_v48, %v1993_v48 }
 0x1e3   : > { %2300 = vst.sshfl [vmem:[%s3285_s29 + $0x6] sm:$0x3 pattern:$0x76325410] %v1997_v45 }
 0x1e4   : > { %2651 = shalt.err (!%p2648_p5)
}
 0x1e5   : > { %s2652_s19 = scalar_lea.hbm %s3314_s7, 128  ;;  %s2656_s9 = scalar_lea.hbm %s3370_s3, 256 }
 0x1e6   : > { %p2653_p6 = scmp.ne.s32.totalorder %s3314_s7, %s2652_s19  ;;  %p2657_p10 = scmp.lt.u32.totalorder %s3314_s7, %s3370_s3 }
 0x1e7   : > { %p2658_p11 = scmp.lt.u32.totalorder %s2656_s9, %s2652_s19  ;;  %p2660_p13 = scmp.lt.u32.totalorder %s2652_s19, %s3314_s7 }
 0x1e8   : > { %p2654_p7 = pnand %p2653_p6, %p2784_p4 }
 0x1e9   : > { %p2659_p12 = por %p2658_p11, %p2657_p10 }
 0x1ea   : > { %p2655_p9 = pneg %p2654_p7 }
 0x1eb   : > { %p2661_p0 = por %p2660_p13, %p2659_p12 }
 0x1ed   : > { %p2662_p1 = pnand %p2661_p0, %p2655_p9 }
 0x1ef   : > { %2665 = shalt.err (!%p2662_p1)
}
 0x1f0   : > { %s2722_s28 = smov 32   ;;  %s2723_s29 = smov 2  }
 0x1f1   : > { %2529 = dma.vmem_to_hbm [thread:$0]  (%p2784_p4), %s3316_s4, 128, %s3314_s7, %s3321_s15, %s2722_s28, %s2722_s28, %s2723_s29  }
 0x1f2 PF: > { %p2535_p2 = scmp.ge.s32.totalorder %s2716_s17, 2  ;;  %s2065_s30 = sand.u32 1, %s2696_s12  }
 0x1f3   : > { %s2066_s5 = scalar_lea.sflag [#allocation3], %s2065_s30 }
 0x1f4   : > { %p2532_p3 = pnand %p2535_p2, %p2791_p8 }
 0x1f6   : > { %2691 = dma.done.wait (!%p2532_p3), %s2066_s5, 128  }
 0x1f7   : > { %2693 = vsyncadd (!%p2532_p3), %s2066_s5, 4294967168  ;;  %s16_s17 = sadd.s32 1, %s2716_s17   ;;  %s3377_s12 = smov %s2700_s13 }
 0x1f8   : > { %p13_p5 = scmp.ge.s32.totalorder %s16_s17, 4   ;;  %s3378_s13 = smov %s2704_s14 }
 0x1f9   : > { %s3379_s14 = smov %s2797_s25  ;;  %s3380_s15 = smov %s2712_s16 }
 0x1fa   : > { %s3381_s16 = smov %s3383_s20  ;;  %15 = sbr.rel (!%p13_p5) target bundleno = 4 (0x4), region = 79 }
 0x201   :  { %2071 = vsyncpa [#allocation3], 1 }
 0x202   :  { %2073 = vsyncpa [#allocation3 + $0x1], 1 }

</bundles_post_ra>
